<compile_context>
chip_gen: v5e
topology: v5e:2x2
jax: 0.10.0
libtpu: 0.0.40
codegen_flags: <defaults>
</compile_context>

<pallas_src>
import functools

import jax
import jax.numpy as jnp
from jax import lax
from jax.experimental import pallas as pl
from jax.experimental.pallas import tpu as pltpu


def _dqn_kernel(x_ref, w1_ref, s1_ref, t1_ref, w2_ref, s2_ref, t2_ref,
                u_ref, hb_ref, o_ref, *, W, A):
    """One batch element per grid step.

    x_ref : (1, Cin, H*W)   input, channels on sublanes, flat spatial on lanes
    w1_ref: (9, 32, Cin)    conv1 per-tap weight, tap index = ky*3 + kx
    s1/t1 : (32, 1)         folded BN1 scale / shift (incl. conv1 bias)
    w2_ref: (9, 64, 32)     conv2 per-tap weight
    s2/t2 : (64, 1)         folded BN2 scale / shift
    u_ref : (A, 64, H*W)    head weight scattered onto the flat spatial grid,
                            zero at columns that are not valid conv2 outputs
    hb_ref: (1, A)          head bias
    o_ref : (1, 1, A)       output Q-values
    """
    SB = x_ref.shape[2]                 # H*W (flat spatial size)
    offs = tuple(ky * W + kx for ky in range(3) for kx in range(3))

    x_img = x_ref[0]                    # (Cin, SB)

    # ---- conv1 + BN1 + ReLU: 9 shifted full-width matmuls on the MXU ----
    acc1 = None
    for t, off in enumerate(offs):
        xs = x_img if off == 0 else pltpu.roll(x_img, shift=SB - off, axis=1)
        d = jnp.dot(w1_ref[t], xs, preferred_element_type=jnp.float32)
        acc1 = d if acc1 is None else acc1 + d
    h1 = jnp.maximum(acc1 * s1_ref[...] + t1_ref[...], 0.0)      # (32, SB)

    # ---- conv2 + BN2 + ReLU: chained tap accumulation into one accumulator ----
    acc2 = None
    for t, off in enumerate(offs):
        hs = h1 if off == 0 else pltpu.roll(h1, shift=SB - off, axis=1)
        d = jnp.dot(w2_ref[t], hs, preferred_element_type=jnp.float32)
        acc2 = d if acc2 is None else acc2 + d
    h2 = jnp.maximum(acc2 * s2_ref[...] + t2_ref[...], 0.0)      # (64, SB)

    # ---- linear head: q[a] = sum_{c,l} h2[c,l] * U[a,c,l]  (U zero-masked) ----
    lane = lax.broadcasted_iota(jnp.int32, (1, A), 1)
    q = jnp.zeros((1, A), jnp.float32)
    for a in range(A):
        qa = jnp.sum(h2 * u_ref[a], keepdims=True)               # (1, 1)
        q = q + jnp.where(lane == a, qa, 0.0)
    o_ref[0] = q + hb_ref[...]


def dqn_forward(x_nchw, p):
    """x_nchw: (B, Cin, H, W) float32 -> (B, A) Q-values."""
    B, Cin, H, W = x_nchw.shape
    A = p["hb"].shape[1]
    SB = H * W

    x = x_nchw.reshape(B, Cin, SB)      # channels x flat-spatial (no transpose)

    kernel = functools.partial(_dqn_kernel, W=W, A=A)

    out = pl.pallas_call(
        kernel,
        out_shape=jax.ShapeDtypeStruct((B, 1, A), jnp.float32),
        grid_spec=pltpu.PrefetchScalarGridSpec(
            num_scalar_prefetch=0,
            grid=(B,),
            in_specs=[
                pl.BlockSpec((1, Cin, SB), lambda b: (b, 0, 0)),
                pl.BlockSpec((9, 32, Cin), lambda b: (0, 0, 0)),
                pl.BlockSpec((32, 1), lambda b: (0, 0)),
                pl.BlockSpec((32, 1), lambda b: (0, 0)),
                pl.BlockSpec((9, 64, 32), lambda b: (0, 0, 0)),
                pl.BlockSpec((64, 1), lambda b: (0, 0)),
                pl.BlockSpec((64, 1), lambda b: (0, 0)),
                pl.BlockSpec((A, 64, SB), lambda b: (0, 0, 0)),
                pl.BlockSpec((1, A), lambda b: (0, 0)),
            ],
            out_specs=pl.BlockSpec((1, 1, A), lambda b: (b, 0, 0)),
        ),
        compiler_params=pltpu.CompilerParams(
            dimension_semantics=("parallel",)),
    )(x, p["w1"], p["s1"], p["t1"], p["w2"], p["s2"], p["t2"],
      p["u"], p["hb"])

    return out[:, 0, :]


def make_params(key, cin, num_actions, H, W):
    """Deterministic synthetic parameters in PyTorch conventions, folded and
    re-laid-out for the kernel."""
    H1, W1 = H - 2, W - 2
    H2, W2 = H1 - 2, W1 - 2
    ks = jax.random.split(key, 14)
    n = jax.random.normal

    conv1_w = 0.10 * n(ks[0], (32, cin, 3, 3), jnp.float32)     # OIHW
    conv1_b = 0.10 * n(ks[1], (32,), jnp.float32)
    g1 = 1.0 + 0.10 * n(ks[2], (32,), jnp.float32)
    be1 = 0.10 * n(ks[3], (32,), jnp.float32)
    m1 = 0.10 * n(ks[4], (32,), jnp.float32)
    v1 = 0.5 + jnp.abs(n(ks[5], (32,), jnp.float32))

    conv2_w = 0.05 * n(ks[6], (64, 32, 3, 3), jnp.float32)      # OIHW
    conv2_b = 0.10 * n(ks[7], (64,), jnp.float32)
    g2 = 1.0 + 0.10 * n(ks[8], (64,), jnp.float32)
    be2 = 0.10 * n(ks[9], (64,), jnp.float32)
    m2 = 0.10 * n(ks[10], (64,), jnp.float32)
    v2 = 0.5 + jnp.abs(n(ks[11], (64,), jnp.float32))

    head_w = 0.01 * n(ks[12], (num_actions, 64 * H2 * W2), jnp.float32)
    head_b = 0.10 * n(ks[13], (num_actions,), jnp.float32)

    eps = 1e-5
    s1 = g1 / jnp.sqrt(v1 + eps)
    t1 = (conv1_b - m1) * s1 + be1
    s2 = g2 / jnp.sqrt(v2 + eps)
    t2 = (conv2_b - m2) * s2 + be2

    # Per-tap conv weights: w[t = ky*3 + kx] = conv_w[:, :, ky, kx]  -> (9, O, I)
    w1t = jnp.transpose(conv1_w, (2, 3, 0, 1)).reshape(9, 32, cin)
    w2t = jnp.transpose(conv2_w, (2, 3, 0, 1)).reshape(9, 64, 32)

    # Head weight: PyTorch flat index is c*H2*W2 + y2*W2 + x2 (CHW flatten).
    # Scatter onto the full (H, W) flat-spatial grid used by the kernel
    # (column l = y2*W + x2), zeros at invalid columns (x2>=W2 or y2>=H2).
    u4 = head_w.reshape(num_actions, 64, H2, W2)
    u = jnp.zeros((num_actions, 64, H, W), jnp.float32)
    u = u.at[:, :, :H2, :W2].set(u4).reshape(num_actions, 64, H * W)

    return {
        "w1": w1t,
        "s1": s1.reshape(32, 1),
        "t1": t1.reshape(32, 1),
        "w2": w2t,
        "s2": s2.reshape(64, 1),
        "t2": t2.reshape(64, 1),
        "u": u,                                  # (A, 64, H*W)
        "hb": head_b.reshape(1, num_actions),
    }


def dqn_reference(x_nchw, p):
    """Pure-JAX reference (same folded params), for verification."""
    B, Cin, H, W = x_nchw.shape
    A = p["hb"].shape[1]
    H2, W2 = H - 4, W - 4

    x = jnp.transpose(x_nchw, (0, 2, 3, 1))                      # NHWC
    w1 = jnp.transpose(p["w1"].reshape(3, 3, 32, Cin), (0, 1, 3, 2))  # HWIO
    y = lax.conv_general_dilated(
        x, w1, (1, 1), "VALID",
        dimension_numbers=("NHWC", "HWIO", "NHWC"),
        precision=lax.Precision.HIGHEST)
    y = jnp.maximum(y * p["s1"][:, 0] + p["t1"][:, 0], 0.0)

    w2 = jnp.transpose(p["w2"].reshape(3, 3, 64, 32), (0, 1, 3, 2))
    y = lax.conv_general_dilated(
        y, w2, (1, 1), "VALID",
        dimension_numbers=("NHWC", "HWIO", "NHWC"),
        precision=lax.Precision.HIGHEST)
    y = jnp.maximum(y * p["s2"][:, 0] + p["t2"][:, 0], 0.0)      # (B,H2,W2,64)

    u = p["u"].reshape(A, 64, H, W)[:, :, :H2, :W2]              # (A,64,H2,W2)
    q = jnp.einsum("byxc,acyx->ba", y, u,
                   precision=lax.Precision.HIGHEST) + p["hb"]
    return q


if __name__ == "__main__":
    # Module config: input_shape=(4,...), width=16, height=16, size=1, A=4.
    B, Cin, H, W, A = 2, 4, 16, 16, 4

    key = jax.random.PRNGKey(0)
    kx, kparam = jax.random.split(key)
    x = jax.random.normal(kx, (B, Cin, H, W), jnp.float32)
    params = make_params(kparam, Cin, A, H, W)

    out = jax.block_until_ready(dqn_forward(x, params))
    ref = dqn_reference(x, params)

    assert out.shape == (B, A), out.shape
    if not jnp.allclose(out, ref, rtol=2e-2, atol=2e-2):
        raise AssertionError(f"kernel/reference mismatch:\n{out}\n{ref}")

    print("KERNEL_OK")
</pallas_src>

<mosaic_0001>
module attributes {stable_mosaic.version = 11 : i64} {
  func.func @_dqn_kernel(%arg0: i32, %arg1: memref<1x4x256xf32, #tpu.memory_space<vmem>>, %arg2: memref<9x32x4xf32, #tpu.memory_space<vmem>>, %arg3: memref<32x1xf32, #tpu.memory_space<vmem>>, %arg4: memref<32x1xf32, #tpu.memory_space<vmem>>, %arg5: memref<9x64x32xf32, #tpu.memory_space<vmem>>, %arg6: memref<64x1xf32, #tpu.memory_space<vmem>>, %arg7: memref<64x1xf32, #tpu.memory_space<vmem>>, %arg8: memref<4x64x256xf32, #tpu.memory_space<vmem>>, %arg9: memref<1x4xf32, #tpu.memory_space<vmem>>, %arg10: memref<1x1x4xf32, #tpu.memory_space<vmem>>) attributes {dimension_semantics = [#tpu.dimension_semantics<parallel>], iteration_bounds = array<i64: 2>, scalar_prefetch = 0 : i64, scratch_operands = 0 : i64, tpu.core_type = #tpu.core_type<tc>, window_params = [{transform_indices = @transform_0, window_bounds = array<i64: 1, 4, 256>}, {pipeline_mode = #tpu.pipeline_mode<synchronous>, transform_indices = @transform_1, window_bounds = array<i64: 9, 32, 4>}, {pipeline_mode = #tpu.pipeline_mode<synchronous>, transform_indices = @transform_2, window_bounds = array<i64: 32, 1>}, {pipeline_mode = #tpu.pipeline_mode<synchronous>, transform_indices = @transform_3, window_bounds = array<i64: 32, 1>}, {pipeline_mode = #tpu.pipeline_mode<synchronous>, transform_indices = @transform_4, window_bounds = array<i64: 9, 64, 32>}, {pipeline_mode = #tpu.pipeline_mode<synchronous>, transform_indices = @transform_5, window_bounds = array<i64: 64, 1>}, {pipeline_mode = #tpu.pipeline_mode<synchronous>, transform_indices = @transform_6, window_bounds = array<i64: 64, 1>}, {pipeline_mode = #tpu.pipeline_mode<synchronous>, transform_indices = @transform_7, window_bounds = array<i64: 4, 64, 256>}, {pipeline_mode = #tpu.pipeline_mode<synchronous>, transform_indices = @transform_8, window_bounds = array<i64: 1, 4>}, {transform_indices = @transform_9, window_bounds = array<i64: 1, 1, 4>}]} {
    %c0 = arith.constant 0 : index
    %c0_0 = arith.constant 0 : index
    %c0_1 = arith.constant 0 : index
    %0 = vector.load %arg1[%c0, %c0_0, %c0_1] : memref<1x4x256xf32, #tpu.memory_space<vmem>>, vector<1x4x256xf32>
    %1 = vector.shape_cast %0 : vector<1x4x256xf32> to vector<4x256xf32>
    %c0_2 = arith.constant 0 : index
    %c0_3 = arith.constant 0 : index
    %c0_4 = arith.constant 0 : index
    %2 = vector.load %arg2[%c0_2, %c0_3, %c0_4] : memref<9x32x4xf32, #tpu.memory_space<vmem>>, vector<1x32x4xf32>
    %3 = vector.shape_cast %2 : vector<1x32x4xf32> to vector<32x4xf32>
    %cst = arith.constant dense<0.000000e+00> : vector<32x256xf32>
    %4 = tpu.matmul %3, %1, %cst {dimension_numbers = #tpu.dot_dimension_numbers<[1], [0], [0], [1], [0, 0, 1, 1], [], []>} : vector<32x4xf32>, vector<4x256xf32>, vector<32x256xf32> -> vector<32x256xf32>
    %c255_i32 = arith.constant 255 : i32
    %5 = tpu.dynamic_rotate %1 by %c255_i32 dim 1 : vector<4x256xf32>, i32 -> vector<4x256xf32>
    %c1 = arith.constant 1 : index
    %c0_5 = arith.constant 0 : index
    %c0_6 = arith.constant 0 : index
    %6 = vector.load %arg2[%c1, %c0_5, %c0_6] : memref<9x32x4xf32, #tpu.memory_space<vmem>>, vector<1x32x4xf32>
    %7 = vector.shape_cast %6 : vector<1x32x4xf32> to vector<32x4xf32>
    %cst_7 = arith.constant dense<0.000000e+00> : vector<32x256xf32>
    %8 = tpu.matmul %7, %5, %cst_7 {dimension_numbers = #tpu.dot_dimension_numbers<[1], [0], [0], [1], [0, 0, 1, 1], [], []>} : vector<32x4xf32>, vector<4x256xf32>, vector<32x256xf32> -> vector<32x256xf32>
    %9 = arith.addf %4, %8 : vector<32x256xf32>
    %c254_i32 = arith.constant 254 : i32
    %10 = tpu.dynamic_rotate %1 by %c254_i32 dim 1 : vector<4x256xf32>, i32 -> vector<4x256xf32>
    %c2 = arith.constant 2 : index
    %c0_8 = arith.constant 0 : index
    %c0_9 = arith.constant 0 : index
    %11 = vector.load %arg2[%c2, %c0_8, %c0_9] : memref<9x32x4xf32, #tpu.memory_space<vmem>>, vector<1x32x4xf32>
    %12 = vector.shape_cast %11 : vector<1x32x4xf32> to vector<32x4xf32>
    %cst_10 = arith.constant dense<0.000000e+00> : vector<32x256xf32>
    %13 = tpu.matmul %12, %10, %cst_10 {dimension_numbers = #tpu.dot_dimension_numbers<[1], [0], [0], [1], [0, 0, 1, 1], [], []>} : vector<32x4xf32>, vector<4x256xf32>, vector<32x256xf32> -> vector<32x256xf32>
    %14 = arith.addf %9, %13 : vector<32x256xf32>
    %c240_i32 = arith.constant 240 : i32
    %15 = tpu.dynamic_rotate %1 by %c240_i32 dim 1 : vector<4x256xf32>, i32 -> vector<4x256xf32>
    %c3 = arith.constant 3 : index
    %c0_11 = arith.constant 0 : index
    %c0_12 = arith.constant 0 : index
    %16 = vector.load %arg2[%c3, %c0_11, %c0_12] : memref<9x32x4xf32, #tpu.memory_space<vmem>>, vector<1x32x4xf32>
    %17 = vector.shape_cast %16 : vector<1x32x4xf32> to vector<32x4xf32>
    %cst_13 = arith.constant dense<0.000000e+00> : vector<32x256xf32>
    %18 = tpu.matmul %17, %15, %cst_13 {dimension_numbers = #tpu.dot_dimension_numbers<[1], [0], [0], [1], [0, 0, 1, 1], [], []>} : vector<32x4xf32>, vector<4x256xf32>, vector<32x256xf32> -> vector<32x256xf32>
    %19 = arith.addf %14, %18 : vector<32x256xf32>
    %c239_i32 = arith.constant 239 : i32
    %20 = tpu.dynamic_rotate %1 by %c239_i32 dim 1 : vector<4x256xf32>, i32 -> vector<4x256xf32>
    %c4 = arith.constant 4 : index
    %c0_14 = arith.constant 0 : index
    %c0_15 = arith.constant 0 : index
    %21 = vector.load %arg2[%c4, %c0_14, %c0_15] : memref<9x32x4xf32, #tpu.memory_space<vmem>>, vector<1x32x4xf32>
    %22 = vector.shape_cast %21 : vector<1x32x4xf32> to vector<32x4xf32>
    %cst_16 = arith.constant dense<0.000000e+00> : vector<32x256xf32>
    %23 = tpu.matmul %22, %20, %cst_16 {dimension_numbers = #tpu.dot_dimension_numbers<[1], [0], [0], [1], [0, 0, 1, 1], [], []>} : vector<32x4xf32>, vector<4x256xf32>, vector<32x256xf32> -> vector<32x256xf32>
    %24 = arith.addf %19, %23 : vector<32x256xf32>
    %c238_i32 = arith.constant 238 : i32
    %25 = tpu.dynamic_rotate %1 by %c238_i32 dim 1 : vector<4x256xf32>, i32 -> vector<4x256xf32>
    %c5 = arith.constant 5 : index
    %c0_17 = arith.constant 0 : index
    %c0_18 = arith.constant 0 : index
    %26 = vector.load %arg2[%c5, %c0_17, %c0_18] : memref<9x32x4xf32, #tpu.memory_space<vmem>>, vector<1x32x4xf32>
    %27 = vector.shape_cast %26 : vector<1x32x4xf32> to vector<32x4xf32>
    %cst_19 = arith.constant dense<0.000000e+00> : vector<32x256xf32>
    %28 = tpu.matmul %27, %25, %cst_19 {dimension_numbers = #tpu.dot_dimension_numbers<[1], [0], [0], [1], [0, 0, 1, 1], [], []>} : vector<32x4xf32>, vector<4x256xf32>, vector<32x256xf32> -> vector<32x256xf32>
    %29 = arith.addf %24, %28 : vector<32x256xf32>
    %c224_i32 = arith.constant 224 : i32
    %30 = tpu.dynamic_rotate %1 by %c224_i32 dim 1 : vector<4x256xf32>, i32 -> vector<4x256xf32>
    %c6 = arith.constant 6 : index
    %c0_20 = arith.constant 0 : index
    %c0_21 = arith.constant 0 : index
    %31 = vector.load %arg2[%c6, %c0_20, %c0_21] : memref<9x32x4xf32, #tpu.memory_space<vmem>>, vector<1x32x4xf32>
    %32 = vector.shape_cast %31 : vector<1x32x4xf32> to vector<32x4xf32>
    %cst_22 = arith.constant dense<0.000000e+00> : vector<32x256xf32>
    %33 = tpu.matmul %32, %30, %cst_22 {dimension_numbers = #tpu.dot_dimension_numbers<[1], [0], [0], [1], [0, 0, 1, 1], [], []>} : vector<32x4xf32>, vector<4x256xf32>, vector<32x256xf32> -> vector<32x256xf32>
    %34 = arith.addf %29, %33 : vector<32x256xf32>
    %c223_i32 = arith.constant 223 : i32
    %35 = tpu.dynamic_rotate %1 by %c223_i32 dim 1 : vector<4x256xf32>, i32 -> vector<4x256xf32>
    %c7 = arith.constant 7 : index
    %c0_23 = arith.constant 0 : index
    %c0_24 = arith.constant 0 : index
    %36 = vector.load %arg2[%c7, %c0_23, %c0_24] : memref<9x32x4xf32, #tpu.memory_space<vmem>>, vector<1x32x4xf32>
    %37 = vector.shape_cast %36 : vector<1x32x4xf32> to vector<32x4xf32>
    %cst_25 = arith.constant dense<0.000000e+00> : vector<32x256xf32>
    %38 = tpu.matmul %37, %35, %cst_25 {dimension_numbers = #tpu.dot_dimension_numbers<[1], [0], [0], [1], [0, 0, 1, 1], [], []>} : vector<32x4xf32>, vector<4x256xf32>, vector<32x256xf32> -> vector<32x256xf32>
    %39 = arith.addf %34, %38 : vector<32x256xf32>
    %c222_i32 = arith.constant 222 : i32
    %40 = tpu.dynamic_rotate %1 by %c222_i32 dim 1 : vector<4x256xf32>, i32 -> vector<4x256xf32>
    %c8 = arith.constant 8 : index
    %c0_26 = arith.constant 0 : index
    %c0_27 = arith.constant 0 : index
    %41 = vector.load %arg2[%c8, %c0_26, %c0_27] : memref<9x32x4xf32, #tpu.memory_space<vmem>>, vector<1x32x4xf32>
    %42 = vector.shape_cast %41 : vector<1x32x4xf32> to vector<32x4xf32>
    %cst_28 = arith.constant dense<0.000000e+00> : vector<32x256xf32>
    %43 = tpu.matmul %42, %40, %cst_28 {dimension_numbers = #tpu.dot_dimension_numbers<[1], [0], [0], [1], [0, 0, 1, 1], [], []>} : vector<32x4xf32>, vector<4x256xf32>, vector<32x256xf32> -> vector<32x256xf32>
    %44 = arith.addf %39, %43 : vector<32x256xf32>
    %c0_29 = arith.constant 0 : index
    %c0_30 = arith.constant 0 : index
    %45 = vector.load %arg3[%c0_29, %c0_30] : memref<32x1xf32, #tpu.memory_space<vmem>>, vector<32x1xf32>
    %46 = vector.broadcast %45 : vector<32x1xf32> to vector<32x256xf32>
    %47 = arith.mulf %44, %46 : vector<32x256xf32>
    %c0_31 = arith.constant 0 : index
    %c0_32 = arith.constant 0 : index
    %48 = vector.load %arg4[%c0_31, %c0_32] : memref<32x1xf32, #tpu.memory_space<vmem>>, vector<32x1xf32>
    %49 = vector.broadcast %48 : vector<32x1xf32> to vector<32x256xf32>
    %50 = arith.addf %47, %49 : vector<32x256xf32>
    %cst_33 = arith.constant 0.000000e+00 : f32
    %51 = vector.broadcast %cst_33 : f32 to vector<32x256xf32>
    %52 = arith.maximumf %50, %51 : vector<32x256xf32>
    %c0_34 = arith.constant 0 : index
    %c0_35 = arith.constant 0 : index
    %c0_36 = arith.constant 0 : index
    %53 = vector.load %arg5[%c0_34, %c0_35, %c0_36] : memref<9x64x32xf32, #tpu.memory_space<vmem>>, vector<1x64x32xf32>
    %54 = vector.shape_cast %53 : vector<1x64x32xf32> to vector<64x32xf32>
    %cst_37 = arith.constant dense<0.000000e+00> : vector<64x256xf32>
    %55 = tpu.matmul %54, %52, %cst_37 {dimension_numbers = #tpu.dot_dimension_numbers<[1], [0], [0], [1], [0, 0, 1, 1], [], []>} : vector<64x32xf32>, vector<32x256xf32>, vector<64x256xf32> -> vector<64x256xf32>
    %c255_i32_38 = arith.constant 255 : i32
    %56 = tpu.dynamic_rotate %52 by %c255_i32_38 dim 1 : vector<32x256xf32>, i32 -> vector<32x256xf32>
    %c1_39 = arith.constant 1 : index
    %c0_40 = arith.constant 0 : index
    %c0_41 = arith.constant 0 : index
    %57 = vector.load %arg5[%c1_39, %c0_40, %c0_41] : memref<9x64x32xf32, #tpu.memory_space<vmem>>, vector<1x64x32xf32>
    %58 = vector.shape_cast %57 : vector<1x64x32xf32> to vector<64x32xf32>
    %cst_42 = arith.constant dense<0.000000e+00> : vector<64x256xf32>
    %59 = tpu.matmul %58, %56, %cst_42 {dimension_numbers = #tpu.dot_dimension_numbers<[1], [0], [0], [1], [0, 0, 1, 1], [], []>} : vector<64x32xf32>, vector<32x256xf32>, vector<64x256xf32> -> vector<64x256xf32>
    %60 = arith.addf %55, %59 : vector<64x256xf32>
    %c254_i32_43 = arith.constant 254 : i32
    %61 = tpu.dynamic_rotate %52 by %c254_i32_43 dim 1 : vector<32x256xf32>, i32 -> vector<32x256xf32>
    %c2_44 = arith.constant 2 : index
    %c0_45 = arith.constant 0 : index
    %c0_46 = arith.constant 0 : index
    %62 = vector.load %arg5[%c2_44, %c0_45, %c0_46] : memref<9x64x32xf32, #tpu.memory_space<vmem>>, vector<1x64x32xf32>
    %63 = vector.shape_cast %62 : vector<1x64x32xf32> to vector<64x32xf32>
    %cst_47 = arith.constant dense<0.000000e+00> : vector<64x256xf32>
    %64 = tpu.matmul %63, %61, %cst_47 {dimension_numbers = #tpu.dot_dimension_numbers<[1], [0], [0], [1], [0, 0, 1, 1], [], []>} : vector<64x32xf32>, vector<32x256xf32>, vector<64x256xf32> -> vector<64x256xf32>
    %65 = arith.addf %60, %64 : vector<64x256xf32>
    %c240_i32_48 = arith.constant 240 : i32
    %66 = tpu.dynamic_rotate %52 by %c240_i32_48 dim 1 : vector<32x256xf32>, i32 -> vector<32x256xf32>
    %c3_49 = arith.constant 3 : index
    %c0_50 = arith.constant 0 : index
    %c0_51 = arith.constant 0 : index
    %67 = vector.load %arg5[%c3_49, %c0_50, %c0_51] : memref<9x64x32xf32, #tpu.memory_space<vmem>>, vector<1x64x32xf32>
    %68 = vector.shape_cast %67 : vector<1x64x32xf32> to vector<64x32xf32>
    %cst_52 = arith.constant dense<0.000000e+00> : vector<64x256xf32>
    %69 = tpu.matmul %68, %66, %cst_52 {dimension_numbers = #tpu.dot_dimension_numbers<[1], [0], [0], [1], [0, 0, 1, 1], [], []>} : vector<64x32xf32>, vector<32x256xf32>, vector<64x256xf32> -> vector<64x256xf32>
    %70 = arith.addf %65, %69 : vector<64x256xf32>
    %c239_i32_53 = arith.constant 239 : i32
    %71 = tpu.dynamic_rotate %52 by %c239_i32_53 dim 1 : vector<32x256xf32>, i32 -> vector<32x256xf32>
    %c4_54 = arith.constant 4 : index
    %c0_55 = arith.constant 0 : index
    %c0_56 = arith.constant 0 : index
    %72 = vector.load %arg5[%c4_54, %c0_55, %c0_56] : memref<9x64x32xf32, #tpu.memory_space<vmem>>, vector<1x64x32xf32>
    %73 = vector.shape_cast %72 : vector<1x64x32xf32> to vector<64x32xf32>
    %cst_57 = arith.constant dense<0.000000e+00> : vector<64x256xf32>
    %74 = tpu.matmul %73, %71, %cst_57 {dimension_numbers = #tpu.dot_dimension_numbers<[1], [0], [0], [1], [0, 0, 1, 1], [], []>} : vector<64x32xf32>, vector<32x256xf32>, vector<64x256xf32> -> vector<64x256xf32>
    %75 = arith.addf %70, %74 : vector<64x256xf32>
    %c238_i32_58 = arith.constant 238 : i32
    %76 = tpu.dynamic_rotate %52 by %c238_i32_58 dim 1 : vector<32x256xf32>, i32 -> vector<32x256xf32>
    %c5_59 = arith.constant 5 : index
    %c0_60 = arith.constant 0 : index
    %c0_61 = arith.constant 0 : index
    %77 = vector.load %arg5[%c5_59, %c0_60, %c0_61] : memref<9x64x32xf32, #tpu.memory_space<vmem>>, vector<1x64x32xf32>
    %78 = vector.shape_cast %77 : vector<1x64x32xf32> to vector<64x32xf32>
    %cst_62 = arith.constant dense<0.000000e+00> : vector<64x256xf32>
    %79 = tpu.matmul %78, %76, %cst_62 {dimension_numbers = #tpu.dot_dimension_numbers<[1], [0], [0], [1], [0, 0, 1, 1], [], []>} : vector<64x32xf32>, vector<32x256xf32>, vector<64x256xf32> -> vector<64x256xf32>
    %80 = arith.addf %75, %79 : vector<64x256xf32>
    %c224_i32_63 = arith.constant 224 : i32
    %81 = tpu.dynamic_rotate %52 by %c224_i32_63 dim 1 : vector<32x256xf32>, i32 -> vector<32x256xf32>
    %c6_64 = arith.constant 6 : index
    %c0_65 = arith.constant 0 : index
    %c0_66 = arith.constant 0 : index
    %82 = vector.load %arg5[%c6_64, %c0_65, %c0_66] : memref<9x64x32xf32, #tpu.memory_space<vmem>>, vector<1x64x32xf32>
    %83 = vector.shape_cast %82 : vector<1x64x32xf32> to vector<64x32xf32>
    %cst_67 = arith.constant dense<0.000000e+00> : vector<64x256xf32>
    %84 = tpu.matmul %83, %81, %cst_67 {dimension_numbers = #tpu.dot_dimension_numbers<[1], [0], [0], [1], [0, 0, 1, 1], [], []>} : vector<64x32xf32>, vector<32x256xf32>, vector<64x256xf32> -> vector<64x256xf32>
    %85 = arith.addf %80, %84 : vector<64x256xf32>
    %c223_i32_68 = arith.constant 223 : i32
    %86 = tpu.dynamic_rotate %52 by %c223_i32_68 dim 1 : vector<32x256xf32>, i32 -> vector<32x256xf32>
    %c7_69 = arith.constant 7 : index
    %c0_70 = arith.constant 0 : index
    %c0_71 = arith.constant 0 : index
    %87 = vector.load %arg5[%c7_69, %c0_70, %c0_71] : memref<9x64x32xf32, #tpu.memory_space<vmem>>, vector<1x64x32xf32>
    %88 = vector.shape_cast %87 : vector<1x64x32xf32> to vector<64x32xf32>
    %cst_72 = arith.constant dense<0.000000e+00> : vector<64x256xf32>
    %89 = tpu.matmul %88, %86, %cst_72 {dimension_numbers = #tpu.dot_dimension_numbers<[1], [0], [0], [1], [0, 0, 1, 1], [], []>} : vector<64x32xf32>, vector<32x256xf32>, vector<64x256xf32> -> vector<64x256xf32>
    %90 = arith.addf %85, %89 : vector<64x256xf32>
    %c222_i32_73 = arith.constant 222 : i32
    %91 = tpu.dynamic_rotate %52 by %c222_i32_73 dim 1 : vector<32x256xf32>, i32 -> vector<32x256xf32>
    %c8_74 = arith.constant 8 : index
    %c0_75 = arith.constant 0 : index
    %c0_76 = arith.constant 0 : index
    %92 = vector.load %arg5[%c8_74, %c0_75, %c0_76] : memref<9x64x32xf32, #tpu.memory_space<vmem>>, vector<1x64x32xf32>
    %93 = vector.shape_cast %92 : vector<1x64x32xf32> to vector<64x32xf32>
    %cst_77 = arith.constant dense<0.000000e+00> : vector<64x256xf32>
    %94 = tpu.matmul %93, %91, %cst_77 {dimension_numbers = #tpu.dot_dimension_numbers<[1], [0], [0], [1], [0, 0, 1, 1], [], []>} : vector<64x32xf32>, vector<32x256xf32>, vector<64x256xf32> -> vector<64x256xf32>
    %95 = arith.addf %90, %94 : vector<64x256xf32>
    %c0_78 = arith.constant 0 : index
    %c0_79 = arith.constant 0 : index
    %96 = vector.load %arg6[%c0_78, %c0_79] : memref<64x1xf32, #tpu.memory_space<vmem>>, vector<64x1xf32>
    %97 = vector.broadcast %96 : vector<64x1xf32> to vector<64x256xf32>
    %98 = arith.mulf %95, %97 : vector<64x256xf32>
    %c0_80 = arith.constant 0 : index
    %c0_81 = arith.constant 0 : index
    %99 = vector.load %arg7[%c0_80, %c0_81] : memref<64x1xf32, #tpu.memory_space<vmem>>, vector<64x1xf32>
    %100 = vector.broadcast %99 : vector<64x1xf32> to vector<64x256xf32>
    %101 = arith.addf %98, %100 : vector<64x256xf32>
    %cst_82 = arith.constant 0.000000e+00 : f32
    %102 = vector.broadcast %cst_82 : f32 to vector<64x256xf32>
    %103 = arith.maximumf %101, %102 : vector<64x256xf32>
    %104 = tpu.iota {dimensions = array<i32: 1>} : vector<1x4xi32>
    %cst_83 = arith.constant 0.000000e+00 : f32
    %105 = vector.broadcast %cst_83 : f32 to vector<1x4xf32>
    %c0_84 = arith.constant 0 : index
    %c0_85 = arith.constant 0 : index
    %c0_86 = arith.constant 0 : index
    %106 = vector.load %arg8[%c0_84, %c0_85, %c0_86] : memref<4x64x256xf32, #tpu.memory_space<vmem>>, vector<1x64x256xf32>
    %107 = vector.shape_cast %106 : vector<1x64x256xf32> to vector<64x256xf32>
    %108 = arith.mulf %103, %107 : vector<64x256xf32>
    %109 = vector.shape_cast %108 : vector<64x256xf32> to vector<1x64x256xf32>
    %cst_87 = arith.constant dense<0.000000e+00> : vector<1xf32>
    %110 = vector.multi_reduction <add>, %109, %cst_87 [1, 2] : vector<1x64x256xf32> to vector<1xf32>
    %111 = vector.shape_cast %110 : vector<1xf32> to vector<1x1x1xf32>
    %112 = vector.extract %111[0, 0, 0] : f32 from vector<1x1x1xf32>
    %113 = vector.broadcast %112 : f32 to vector<1x1xf32>
    %c0_i32 = arith.constant 0 : i32
    %114 = vector.broadcast %c0_i32 : i32 to vector<1x4xi32>
    %115 = arith.cmpi eq, %104, %114 : vector<1x4xi32>
    %cst_88 = arith.constant 0.000000e+00 : f32
    %116 = vector.shape_cast %113 : vector<1x1xf32> to vector<1x1xf32>
    %117 = vector.broadcast %116 : vector<1x1xf32> to vector<1x4xf32>
    %118 = vector.broadcast %cst_88 : f32 to vector<1x4xf32>
    %119 = arith.select %115, %117, %118 : vector<1x4xi1>, vector<1x4xf32>
    %120 = arith.addf %105, %119 : vector<1x4xf32>
    %c1_89 = arith.constant 1 : index
    %c0_90 = arith.constant 0 : index
    %c0_91 = arith.constant 0 : index
    %121 = vector.load %arg8[%c1_89, %c0_90, %c0_91] : memref<4x64x256xf32, #tpu.memory_space<vmem>>, vector<1x64x256xf32>
    %122 = vector.shape_cast %121 : vector<1x64x256xf32> to vector<64x256xf32>
    %123 = arith.mulf %103, %122 : vector<64x256xf32>
    %124 = vector.shape_cast %123 : vector<64x256xf32> to vector<1x64x256xf32>
    %cst_92 = arith.constant dense<0.000000e+00> : vector<1xf32>
    %125 = vector.multi_reduction <add>, %124, %cst_92 [1, 2] : vector<1x64x256xf32> to vector<1xf32>
    %126 = vector.shape_cast %125 : vector<1xf32> to vector<1x1x1xf32>
    %127 = vector.extract %126[0, 0, 0] : f32 from vector<1x1x1xf32>
    %128 = vector.broadcast %127 : f32 to vector<1x1xf32>
    %c1_i32 = arith.constant 1 : i32
    %129 = vector.broadcast %c1_i32 : i32 to vector<1x4xi32>
    %130 = arith.cmpi eq, %104, %129 : vector<1x4xi32>
    %cst_93 = arith.constant 0.000000e+00 : f32
    %131 = vector.shape_cast %128 : vector<1x1xf32> to vector<1x1xf32>
    %132 = vector.broadcast %131 : vector<1x1xf32> to vector<1x4xf32>
    %133 = vector.broadcast %cst_93 : f32 to vector<1x4xf32>
    %134 = arith.select %130, %132, %133 : vector<1x4xi1>, vector<1x4xf32>
    %135 = arith.addf %120, %134 : vector<1x4xf32>
    %c2_94 = arith.constant 2 : index
    %c0_95 = arith.constant 0 : index
    %c0_96 = arith.constant 0 : index
    %136 = vector.load %arg8[%c2_94, %c0_95, %c0_96] : memref<4x64x256xf32, #tpu.memory_space<vmem>>, vector<1x64x256xf32>
    %137 = vector.shape_cast %136 : vector<1x64x256xf32> to vector<64x256xf32>
    %138 = arith.mulf %103, %137 : vector<64x256xf32>
    %139 = vector.shape_cast %138 : vector<64x256xf32> to vector<1x64x256xf32>
    %cst_97 = arith.constant dense<0.000000e+00> : vector<1xf32>
    %140 = vector.multi_reduction <add>, %139, %cst_97 [1, 2] : vector<1x64x256xf32> to vector<1xf32>
    %141 = vector.shape_cast %140 : vector<1xf32> to vector<1x1x1xf32>
    %142 = vector.extract %141[0, 0, 0] : f32 from vector<1x1x1xf32>
    %143 = vector.broadcast %142 : f32 to vector<1x1xf32>
    %c2_i32 = arith.constant 2 : i32
    %144 = vector.broadcast %c2_i32 : i32 to vector<1x4xi32>
    %145 = arith.cmpi eq, %104, %144 : vector<1x4xi32>
    %cst_98 = arith.constant 0.000000e+00 : f32
    %146 = vector.shape_cast %143 : vector<1x1xf32> to vector<1x1xf32>
    %147 = vector.broadcast %146 : vector<1x1xf32> to vector<1x4xf32>
    %148 = vector.broadcast %cst_98 : f32 to vector<1x4xf32>
    %149 = arith.select %145, %147, %148 : vector<1x4xi1>, vector<1x4xf32>
    %150 = arith.addf %135, %149 : vector<1x4xf32>
    %c3_99 = arith.constant 3 : index
    %c0_100 = arith.constant 0 : index
    %c0_101 = arith.constant 0 : index
    %151 = vector.load %arg8[%c3_99, %c0_100, %c0_101] : memref<4x64x256xf32, #tpu.memory_space<vmem>>, vector<1x64x256xf32>
    %152 = vector.shape_cast %151 : vector<1x64x256xf32> to vector<64x256xf32>
    %153 = arith.mulf %103, %152 : vector<64x256xf32>
    %154 = vector.shape_cast %153 : vector<64x256xf32> to vector<1x64x256xf32>
    %cst_102 = arith.constant dense<0.000000e+00> : vector<1xf32>
    %155 = vector.multi_reduction <add>, %154, %cst_102 [1, 2] : vector<1x64x256xf32> to vector<1xf32>
    %156 = vector.shape_cast %155 : vector<1xf32> to vector<1x1x1xf32>
    %157 = vector.extract %156[0, 0, 0] : f32 from vector<1x1x1xf32>
    %158 = vector.broadcast %157 : f32 to vector<1x1xf32>
    %c3_i32 = arith.constant 3 : i32
    %159 = vector.broadcast %c3_i32 : i32 to vector<1x4xi32>
    %160 = arith.cmpi eq, %104, %159 : vector<1x4xi32>
    %cst_103 = arith.constant 0.000000e+00 : f32
    %161 = vector.shape_cast %158 : vector<1x1xf32> to vector<1x1xf32>
    %162 = vector.broadcast %161 : vector<1x1xf32> to vector<1x4xf32>
    %163 = vector.broadcast %cst_103 : f32 to vector<1x4xf32>
    %164 = arith.select %160, %162, %163 : vector<1x4xi1>, vector<1x4xf32>
    %165 = arith.addf %150, %164 : vector<1x4xf32>
    %c0_104 = arith.constant 0 : index
    %c0_105 = arith.constant 0 : index
    %166 = vector.load %arg9[%c0_104, %c0_105] : memref<1x4xf32, #tpu.memory_space<vmem>>, vector<1x4xf32>
    %167 = arith.addf %165, %166 : vector<1x4xf32>
    %c0_106 = arith.constant 0 : index
    %c0_107 = arith.constant 0 : index
    %c0_108 = arith.constant 0 : index
    %168 = vector.load %arg10[%c0_106, %c0_107, %c0_108] : memref<1x1x4xf32, #tpu.memory_space<vmem>>, vector<1x1x4xf32>
    %169 = vector.shape_cast %168 : vector<1x1x4xf32> to vector<1x4xf32>
    %170 = vector.shape_cast %167 : vector<1x4xf32> to vector<1x1x4xf32>
    tpu.vector_store %arg10[%c0_106, %c0_107, %c0_108], %170 {strides = array<i32>} : memref<1x1x4xf32, #tpu.memory_space<vmem>>, vector<1x1x4xf32>,
    return
  }
  func.func @transform_0(%arg0: i32) -> (i32, i32, i32) {
    %c0_i32 = arith.constant 0 : i32
    %c0_i32_0 = arith.constant 0 : i32
    %c0_i32_1 = arith.constant 0 : i32
    return %arg0, %c0_i32, %c0_i32_0 : i32, i32, i32
  }
  func.func @transform_1(%arg0: i32) -> (i32, i32, i32) {
    %c0_i32 = arith.constant 0 : i32
    %c0_i32_0 = arith.constant 0 : i32
    %c0_i32_1 = arith.constant 0 : i32
    %c0_i32_2 = arith.constant 0 : i32
    return %c0_i32, %c0_i32_0, %c0_i32_1 : i32, i32, i32
  }
  func.func @transform_2(%arg0: i32) -> (i32, i32) {
    %c0_i32 = arith.constant 0 : i32
    %c0_i32_0 = arith.constant 0 : i32
    %c0_i32_1 = arith.constant 0 : i32
    return %c0_i32, %c0_i32_0 : i32, i32
  }
  func.func @transform_3(%arg0: i32) -> (i32, i32) {
    %c0_i32 = arith.constant 0 : i32
    %c0_i32_0 = arith.constant 0 : i32
    %c0_i32_1 = arith.constant 0 : i32
    return %c0_i32, %c0_i32_0 : i32, i32
  }
  func.func @transform_4(%arg0: i32) -> (i32, i32, i32) {
    %c0_i32 = arith.constant 0 : i32
    %c0_i32_0 = arith.constant 0 : i32
    %c0_i32_1 = arith.constant 0 : i32
    %c0_i32_2 = arith.constant 0 : i32
    return %c0_i32, %c0_i32_0, %c0_i32_1 : i32, i32, i32
  }
  func.func @transform_5(%arg0: i32) -> (i32, i32) {
    %c0_i32 = arith.constant 0 : i32
    %c0_i32_0 = arith.constant 0 : i32
    %c0_i32_1 = arith.constant 0 : i32
    return %c0_i32, %c0_i32_0 : i32, i32
  }
  func.func @transform_6(%arg0: i32) -> (i32, i32) {
    %c0_i32 = arith.constant 0 : i32
    %c0_i32_0 = arith.constant 0 : i32
    %c0_i32_1 = arith.constant 0 : i32
    return %c0_i32, %c0_i32_0 : i32, i32
  }
  func.func @transform_7(%arg0: i32) -> (i32, i32, i32) {
    %c0_i32 = arith.constant 0 : i32
    %c0_i32_0 = arith.constant 0 : i32
    %c0_i32_1 = arith.constant 0 : i32
    %c0_i32_2 = arith.constant 0 : i32
    return %c0_i32, %c0_i32_0, %c0_i32_1 : i32, i32, i32
  }
  func.func @transform_8(%arg0: i32) -> (i32, i32) {
    %c0_i32 = arith.constant 0 : i32
    %c0_i32_0 = arith.constant 0 : i32
    %c0_i32_1 = arith.constant 0 : i32
    return %c0_i32, %c0_i32_0 : i32, i32
  }
  func.func @transform_9(%arg0: i32) -> (i32, i32, i32) {
    %c0_i32 = arith.constant 0 : i32
    %c0_i32_0 = arith.constant 0 : i32
    %c0_i32_1 = arith.constant 0 : i32
    return %arg0, %c0_i32, %c0_i32_0 : i32, i32, i32
  }
}

</mosaic_0001>

<bundles_post_ra>
// kernel: tpu_custom_call.1
= control target key start
LH: loop header
LB: loop body
LE: loop exit
PB: predicated region body
PF: predicated region fallthrough
CT: control target
= control target key end

     0   :  { %14 = vsyncpa [#allocation3], 0  ;;  %s5334_s0 = inlined_call_operand.vmem [shape: f32[2,4,256], index: 0, kind: input, shape index: {}]   ;;  %s5335_s1 = inlined_call_operand.vmem [shape: f32[9,32,4], index: 1, kind: input, shape index: {}]   ;;  %s5336_s2 = inlined_call_operand.vmem [shape: f32[32,1], index: 2, kind: input, shape index: {}]   ;;  %s5337_s3 = inlined_call_operand.vmem [shape: f32[32,1], index: 3, kind: input, shape index: {}]   ;;  %s5338_s4 = inlined_call_operand.vmem [shape: f32[9,64,32], index: 4, kind: input, shape index: {}]   ;;  %s5339_s5 = inlined_call_operand.vmem [shape: f32[64,1], index: 5, kind: input, shape index: {}]   ;;  %s5340_s6 = inlined_call_operand.vmem [shape: f32[64,1], index: 6, kind: input, shape index: {}]   ;;  %s5341_s7 = inlined_call_operand.vmem [shape: f32[4,64,256], index: 7, kind: input, shape index: {}]   ;;  %s5342_s8 = inlined_call_operand.vmem [shape: f32[1,4], index: 8, kind: input, shape index: {}]   ;;  %s5343_s9 = inlined_call_operand.hbm [shape: f32[2,1,4], index: 9, kind: output, shape index: {}]  }
   0x1   :  { %16 = vsyncpa [#allocation3 + $0x1], 0  ;;  %s3818_s30 = smov 0   ;;  %s3820_s10 = smov 0  }
   0x2   :  { %s3822_s11 = smov 0   ;;  %s3824_s12 = smov 0  }
   0x3 LB: > { %s3839_s13 = sadd.s32 4294967295, %s3757_s12   ;;  %s3087_s14 = sadd.s32 4294967294, %s3757_s12   ;;  %s3757_s12 = sphi %s3824_s12, %s5374_s12   ;;  %s3753_s11 = sphi %s3822_s11, %s5373_s11   ;;  %s3749_s10 = sphi %s3820_s10, %s5372_s10   ;;  %s3745_s30 = sphi %s3818_s30, %s5371_s30  }
   0x4   : > { %s3843_s15 = sadd.s32 1, %s3757_s12   ;;  %s223_s16 = sadd.s32 1, %s3753_s11 }
   0x5   : > { %s220_s17 = ssub.s32 %s3757_s12, %s3843_s15  ;;  %p233_p0 = scmp.ne.s32.totalorder %s3753_s11, %s3749_s10 }
   0x6   : > { %p221_p1 = scmp.eq.s32.totalorder %s220_s17, 0  ;;  %p234_p2 = scmp.eq.s32.totalorder %s3839_s13, 1 }
   0x7   : > { %p239_p3 = scmp.ne.s32.totalorder %s3749_s10, %s3745_s30  ;;  %p240_p4 = scmp.eq.s32.totalorder %s3087_s14, 1 }
   0x8   : > { %s3854_s18 = scalar_select %p221_p1, %s3753_s11, %s223_s16  }
   0x9   : > { %p3856_p5 = por %p234_p2, %p233_p0  ;;  %p3860_p6 = por %p240_p4, %p239_p3 }
   0xa   : > { %p3090_p7 = scmp.ge.s32.totalorder %s3757_s12, 1  ;;  %p290_p8 = scmp.lt.s32.totalorder %s3757_s12, 3 }
   0xc   : > { %p291_p9 = pnand %p3090_p7, %p290_p8 }
   0xe   : > { %294 = sbr.rel (%p291_p9) target bundleno = 1245 (0x4dd), region = 56 }
  0x13   : > { %p325_p10 = scmp.lt.s32.totalorder %s3839_s13, 1  ;;  %s3759_s26 = smov 127   ;;  %vm368_vm0 = vcmask 1043456   ;;  %vm355_vm1 = vcmask 31744   ;;  %v333_v17 = vld [vmem:[%s5335_s1 + $0x10] sm:$0xff]  ;;  %v334_v18 = vld [vmem:[%s5335_s1 + $0x18] sm:$0xff]  ;;  %v345_v20 = vlaneseq }
  0x14   : > { %s3760_s27 = smov 126   ;;  %s3761_s28 = smov 112   ;;  %v3093_v24 = vld [vmem:[%s5335_s1 + $0x20] sm:$0xff]  ;;  %v3094_v28 = vld [vmem:[%s5335_s1 + $0x28] sm:$0xff]  ;;  %v3095_v35 = vld [vmem:[%s5335_s1 + $0x30] sm:$0xff]  ;;  %vm1330_vm10 = vcmask 261120  }
  0x15   : > { %s326_s21 = scalar_select %p325_p10, %s3839_s13, 1  ;;  %v3904_v22 = vand.u32 127, %v345_v20  ;;  %v3131_v32 = vld [vmem:[%s5335_s1 + $0x60] sm:$0xff]  ;;  %v3132_v39 = vld [vmem:[%s5335_s1 + $0x68] sm:$0xff]  ;;  %v3096_v40 = vld [vmem:[%s5335_s1 + $0x38] sm:$0xff]  ;;  %vm3017_vm15 = vcmask 24576  }
  0x16   : > { %s3762_s29 = smov 111   ;;  %s5348_s14 = smov 110   ;;  %v3133_v41 = vld [vmem:[%s5335_s1 + $0x70] sm:$0xff]  ;;  %v331_v42 = vld [vmem:[%s5335_s1] sm:$0xff]  ;;  %v3134_v44 = vld [vmem:[%s5335_s1 + $0x78] sm:$0xff] }
  0x17   : > { %s3473_s22 = sshll.u32 %s326_s21, 3  ;;  %s5350_s16 = smov 96   ;;  %5357 = vst [vmem:[#allocation5_spill] sm:$0xff] %v3904_v22  ;;  %vm347_vm2 = vcmp.lt.s32.totalorder %v3904_v22, 127  ;;  %vm620_vm3 = vcmp.lt.s32.totalorder %v3904_v22, 112  ;;  %vm519_vm4 = vcmp.lt.s32.totalorder %v3904_v22, 126 }
  0x18   : > { %s329_s25 = scalar_lea.vmem %s5334_s0, %s3473_s22  ;;  %s5346_s17 = smov 95   ;;  %vm721_vm5 = vcmp.lt.s32.totalorder %v3904_v22, 111  ;;  %v332_v48 = vld [vmem:[%s5335_s1 + $0x8] sm:$0xff]  ;;  %vm822_vm6 = vcmp.lt.s32.totalorder %v3904_v22, 110  ;;  %v3159_v51 = vld [vmem:[%s5335_s1 + $0xa0] sm:$0xff]  ;;  %v3161_v57 = vld [vmem:[%s5335_s1 + $0xb0] sm:$0xff] }
  0x19   : > { %v330_v0 = vld [vmem:[%s329_s25] sm:$0xff]  ;;  %s5344_s25 = smov 94   ;;  %v3160_v55 = vld [vmem:[%s5335_s1 + $0xa8] sm:$0xff]  ;;  %v3119_v58 = vld [vmem:[%s5335_s1 + $0x50] sm:$0xff]  ;;  %vm923_vm7 = vcmp.lt.s32.totalorder %v3904_v22, 96  ;;  %vm1024_vm8 = vcmp.lt.s32.totalorder %v3904_v22, 95 }
  0x1a   : > { %336 = vst [vmem:[#allocation1] ss:$2 sm:$0xff] %v330_v0  ;;  %v3117_v54 = vld [vmem:[%s5335_s1 + $0x40] sm:$0xff]  ;;  %v3118_v56 = vld [vmem:[%s5335_s1 + $0x48] sm:$0xff]  ;;  %v3162_v60 = vld [vmem:[%s5335_s1 + $0xb8] sm:$0xff]  ;;  %vm1125_vm9 = vcmp.lt.s32.totalorder %v3904_v22, 94 }
  0x1b   : > { %v1218_v20 = vld [vmem:[%s5336_s2 + $0x8] sm:$0xff]  ;;  %s5366_s23 = smov 96   ;;  %s323_s22 = sand.u32 1, %s3749_s10  }
  0x21   : > { %v337_v1 = vld.sshfl [vmem:[#allocation1] sm:$0xff pattern:$0x75316420]  ;;  %v338_v2 = vld.sshfl [vmem:[#allocation1 + $0x8] sm:$0xff pattern:$0x75316420] }
  0x22   : > { %341 = vrot.lane.b32.xlu0 %v337_v1, %s3759_s26  ;;  %433 = vst [vmem:[#allocation1] ss:$2 sm:$0xff] %v330_v0 }
  0x29   : > { %v3872_v3 = vld.sshfl [vmem:[#allocation1] sm:$0xff pattern:$0x75316420]  ;;  %v3874_v4 = vld.sshfl [vmem:[#allocation1 + $0x8] sm:$0xff pattern:$0x75316420] }
  0x2a   : > { %343 = vrot.lane.b32.xlu0 %v338_v2, %s3759_s26  ;;  %510 = vst [vmem:[#allocation1] ss:$2 sm:$0xff] %v330_v0  ;;  %3474 = vmatpush.msk.msra.mxu2 %vm368_vm0, %v3872_v3 }
  0x2b   : > { %3475 = vmatpush.msk.msra.mxu3 %vm368_vm0, %v3874_v4  ;;  %3110 = vmatmul.msk.f32.vlgmr.msra.gmra.mxu2 %vm355_vm1, %v333_v17 }
  0x2c   : > { %3115 = vmatmul.msk.f32.vlgmr.msra.gmra.mxu3 %vm355_vm1, %v333_v17  ;;  %v3767_v17 = vmov 0  }
  0x2d   : > { %3532 = vset.pattern.permute.xlu1 %v3767_v17  ;;  %3534 = vset.pattern.permute.xlu0 %v3767_v17 }
  0x2e   : > { %3533 = vset.pattern.permute.xlu2 %v3767_v17 }
  0x31   : > { %v511_v5 = vld.sshfl [vmem:[#allocation1] sm:$0xff pattern:$0x75316420]  ;;  %v512_v6 = vld.sshfl [vmem:[#allocation1 + $0x8] sm:$0xff pattern:$0x75316420] }
  0x32   : > { %515 = vrot.lane.b32.xlu1 %v511_v5, %s3760_s27  ;;  %611 = vst [vmem:[#allocation1] ss:$2 sm:$0xff] %v330_v0 }
  0x33   : > { %3111 = vmatmul.msk.f32.gmra.mxu2 %vm355_vm1, %v334_v18 }
  0x34   : > { %3116 = vmatmul.msk.f32.gmra.mxu3 %vm355_vm1, %v334_v18  ;;  %v1220_v18 = vld [vmem:[%s5336_s2 + $0x18] sm:$0xff] }
  0x39   : > { %v612_v7 = vld.sshfl [vmem:[#allocation1] sm:$0xff pattern:$0x75316420]  ;;  %v613_v8 = vld.sshfl [vmem:[#allocation1 + $0x8] sm:$0xff pattern:$0x75316420] }
  0x3a   : > { %517 = vrot.lane.b32.xlu1 %v512_v6, %s3760_s27  ;;  %616 = vrot.lane.b32.xlu2 %v612_v7, %s3761_s28  ;;  %712 = vst [vmem:[#allocation1] ss:$2 sm:$0xff] %v330_v0  ;;  %v3145_v6 = vld [vmem:[%s5335_s1 + $0x80] sm:$0xff]  ;;  %v3188_v7 = vld [vmem:[%s5335_s1 + $0xe8] sm:$0xff] }
  0x41   : > { %v713_v9 = vld.sshfl [vmem:[#allocation1] sm:$0xff pattern:$0x75316420]  ;;  %v714_v10 = vld.sshfl [vmem:[#allocation1 + $0x8] sm:$0xff pattern:$0x75316420] }
  0x42   : > { %618 = vrot.lane.b32.xlu2 %v613_v8, %s3761_s28  ;;  %717 = vrot.lane.b32.xlu0 %v713_v9, %s3762_s29  ;;  %813 = vst [vmem:[#allocation1] ss:$2 sm:$0xff] %v330_v0  ;;  %v3146_v8 = vld [vmem:[%s5335_s1 + $0x88] sm:$0xff]  ;;  %v3189_v9 = vld [vmem:[%s5335_s1 + $0xf0] sm:$0xff] }
  0x43   : > { %719 = vrot.lane.b32.xlu1 %v714_v10, %s3762_s29  ;;  %v3147_v10 = vld [vmem:[%s5335_s1 + $0x90] sm:$0xff] }
  0x49   : > { %v815_v11 = vld.sshfl [vmem:[#allocation1 + $0x8] sm:$0xff pattern:$0x75316420]  ;;  %v814_v12 = vld.sshfl [vmem:[#allocation1] sm:$0xff pattern:$0x75316420] }
  0x4a   : > { %820 = vrot.lane.b32.xlu0 %v815_v11, %s5348_s14  ;;  %818 = vrot.lane.b32.xlu2 %v814_v12, %s5348_s14  ;;  %914 = vst [vmem:[#allocation1] ss:$2 sm:$0xff] %v330_v0  ;;  %v3190_v11 = vld [vmem:[%s5335_s1 + $0xf8] sm:$0xff] }
  0x4b   : > { %v3148_v12 = vld [vmem:[%s5335_s1 + $0x98] sm:$0xff] }
  0x51   : > { %v915_v13 = vld.sshfl [vmem:[#allocation1] sm:$0xff pattern:$0x75316420]  ;;  %v916_v14 = vld.sshfl [vmem:[#allocation1 + $0x8] sm:$0xff pattern:$0x75316420] }
  0x52   : > { %919 = vrot.lane.b32.xlu1 %v915_v13, %s5350_s16  ;;  %1015 = vst [vmem:[#allocation1] ss:$2 sm:$0xff] %v330_v0  ;;  %921 = vrot.lane.b32.xlu2 %v916_v14, %s5350_s16 }
  0x59   : > { %v1017_v15 = vld.sshfl [vmem:[#allocation1 + $0x8] sm:$0xff pattern:$0x75316420]  ;;  %v1016_v16 = vld.sshfl [vmem:[#allocation1] sm:$0xff pattern:$0x75316420] }
  0x5a   : > { %1022 = vrot.lane.b32.xlu1 %v1017_v15, %s5346_s17  ;;  %1020 = vrot.lane.b32.xlu0 %v1016_v16, %s5346_s17  ;;  %1116 = vst [vmem:[#allocation1] ss:$2 sm:$0xff] %v330_v0  ;;  %v3120_v0 = vld [vmem:[%s5335_s1 + $0x58] sm:$0xff] }
  0x61   : > { %v1118_v19 = vld.sshfl [vmem:[#allocation1 + $0x8] sm:$0xff pattern:$0x75316420]  ;;  %v1117_v31 = vld.sshfl [vmem:[#allocation1] sm:$0xff pattern:$0x75316420] }
  0x62   : > { %1123 = vrot.lane.b32.xlu0 %v1118_v19, %s5344_s25  ;;  %1121 = vrot.lane.b32.xlu2 %v1117_v31, %s5344_s25  ;;  %v3173_v19 = vld [vmem:[%s5335_s1 + $0xc0] sm:$0xff]  ;;  %v3176_v31 = vld [vmem:[%s5335_s1 + $0xd8] sm:$0xff]  ;;  %s324_s25 = scalar_lea.vmem [#allocation2], %s323_s22 }
  0x63   : > { %1238 = vperm.xlu1 %3532, %v1220_v18   ;;  %s3030_s14 = sshll.u32 %s324_s25, 4  ;;  %s3031_s14 = int_to_ptr.vmem [resolvable:$true] %s3030_s14 }
  0x6b   : > { %1228 = vperm.xlu1 %3532, %v1218_v20  }
  0x94   : > { %v342_v21 = vpop.permute.xlu0 %341  ;;  %v617_v27 = vpop.permute.xlu2 %616 }
  0x9c   : > { %v344_v23 = vpop.permute.xlu0 %343  ;;  %v619_v30 = vpop.permute.xlu2 %618 }
  0x9d   : > { %v348_v25 = vsel %vm347_vm2, %v342_v21, %v344_v23  ;;  %v349_v26 = vsel %vm347_vm2, %v344_v23, %v342_v21  ;;  %v622_v33 = vsel %vm620_vm3, %v619_v30, %v617_v27  ;;  %v621_v34 = vsel %vm620_vm3, %v617_v27, %v619_v30  ;;  %v3174_v21 = vld [vmem:[%s5335_s1 + $0xc8] sm:$0xff]  ;;  %v1252_v23 = vld [vmem:[%s5337_s3 + $0x18] sm:$0xff]  ;;  %v3175_v27 = vld [vmem:[%s5335_s1 + $0xd0] sm:$0xff] }
  0x9e   : > { %3097 = vmatpush.msk.msra.mxu0 %vm368_vm0, %v348_v25  ;;  %3102 = vmatpush.msk.msra.mxu1 %vm368_vm0, %v349_v26 }
  0x9f   : > { %3098 = vmatmul.msk.f32.vlgmr.msra.gmra.mxu0 %vm355_vm1, %v3093_v24  ;;  %3103 = vmatmul.msk.f32.vlgmr.msra.gmra.mxu1 %vm355_vm1, %v3093_v24  ;;  %v1217_v24 = vld [vmem:[%s5336_s2] sm:$0xff] }
  0xa0   : > { %3107 = vmatpush.msk.msrb.mxu0 %vm368_vm0, %v3872_v3  ;;  %3112 = vmatpush.msk.msrb.mxu1 %vm368_vm0, %v3874_v4  ;;  %v3187_v3 = vld [vmem:[%s5335_s1 + $0xe0] sm:$0xff] }
  0xa1   : > { %3140 = vmatpush.msk.msrb.mxu3 %vm368_vm0, %v622_v33  ;;  %3135 = vmatpush.msk.msrb.mxu2 %vm368_vm0, %v621_v34  ;;  %v3201_v34 = vld [vmem:[%s5335_s1 + $0x100] sm:$0xff] }
  0xa2   : > { %3136 = vmatmul.msk.f32.vlgmr.msrb.gmra.mxu2 %vm355_vm1, %v3131_v32  ;;  %3141 = vmatmul.msk.f32.vlgmr.msrb.gmra.mxu3 %vm355_vm1, %v3131_v32 }
  0xa3   : > { %1270 = vperm.xlu0 %3534, %v1252_v23   ;;  %1223 = vperm.xlu1 %3532, %v1217_v24  }
  0xa4   : > { %v516_v29 = vpop.permute.xlu1 %515  ;;  %v819_v50 = vpop.permute.xlu2 %818 }
  0xa7   : > { %3099 = vmatmul.msk.f32.gmra.mxu0 %vm355_vm1, %v3094_v28  ;;  %3104 = vmatmul.msk.f32.gmra.mxu1 %vm355_vm1, %v3094_v28  ;;  %v1249_v28 = vld [vmem:[%s5337_s3] sm:$0xff] }
  0xaa   : > { %3137 = vmatmul.msk.f32.gmra.mxu2 %vm355_vm1, %v3132_v39  ;;  %3142 = vmatmul.msk.f32.gmra.mxu3 %vm355_vm1, %v3132_v39  ;;  %v1251_v39 = vld [vmem:[%s5337_s3 + $0x10] sm:$0xff] }
  0xab   : > { %1255 = vperm.xlu0 %3534, %v1249_v28  }
  0xac   : > { %v518_v36 = vpop.permute.xlu1 %517  ;;  %v922_v61 = vpop.permute.xlu2 %921 }
  0xad   : > { %v520_v37 = vsel %vm519_vm4, %v516_v29, %v518_v36  ;;  %v521_v38 = vsel %vm519_vm4, %v518_v36, %v516_v29 }
  0xae   : > { %3121 = vmatpush.msk.msra.mxu0 %vm368_vm0, %v520_v37  ;;  %3126 = vmatpush.msk.msra.mxu1 %vm368_vm0, %v521_v38  ;;  %v3202_v38 = vld [vmem:[%s5335_s1 + $0x108] sm:$0xff] }
  0xaf   : > { %3100 = vmatmul.msk.f32.gmra.mxu0 %vm355_vm1, %v3095_v35  ;;  %3105 = vmatmul.msk.f32.gmra.mxu1 %vm355_vm1, %v3095_v35  ;;  %v1219_v35 = vld [vmem:[%s5336_s2 + $0x10] sm:$0xff] }
  0xb0   : > { %1233 = vperm.xlu2 %3533, %v1219_v35  }
  0xb2   : > { %3138 = vmatmul.msk.f32.gmra.mxu2 %vm355_vm1, %v3133_v41  ;;  %3143 = vmatmul.msk.f32.gmra.mxu3 %vm355_vm1, %v3133_v41 }
  0xb4   : > { %v718_v43 = vpop.permute.xlu0 %717 }
  0xb5   : > { %v720_v45 = vpop.permute.xlu1 %719 }
  0xb6   : > { %v722_v46 = vsel %vm721_vm5, %v718_v43, %v720_v45  ;;  %v723_v47 = vsel %vm721_vm5, %v720_v45, %v718_v43  ;;  %v4167_v43 = vpop.f32.mrf.mxu3  ;;  %v1250_v45 = vld [vmem:[%s5337_s3 + $0x8] sm:$0xff] }
  0xb7   : > { %3101 = vmatmul.msk.f32.gmra.mxu0 %vm355_vm1, %v3096_v40  ;;  %3106 = vmatmul.msk.f32.gmra.mxu1 %vm355_vm1, %v3096_v40 }
  0xb8   : > { %1265 = vperm.xlu2 %3533, %v1251_v39  }
  0xba   : > { %3139 = vmatmul.msk.f32.gmra.mxu2 %vm355_vm1, %v3134_v44  ;;  %3144 = vmatmul.msk.f32.gmra.mxu3 %vm355_vm1, %v3134_v44  ;;  %v4169_v44 = vpop.f32.mrf.mxu2 }
  0xbc   : > { %v821_v49 = vpop.permute.xlu0 %820  ;;  %v1122_v14 = vpop.permute.xlu2 %1121 }
  0xbd   : > { %v823_v52 = vsel %vm822_vm6, %v819_v50, %v821_v49  ;;  %v824_v53 = vsel %vm822_vm6, %v821_v49, %v819_v50 }
  0xbe   : > { %3163 = vmatpush.msk.msra.mxu2 %vm368_vm0, %v823_v52  ;;  %3168 = vmatpush.msk.msra.mxu3 %vm368_vm0, %v824_v53  ;;  %v4179_v49 = vpop.f32.mrf.mxu3 }
  0xbf   : > { %3108 = vmatmul.msk.f32.vlgmr.msrb.gmra.mxu0 %vm355_vm1, %v331_v42  ;;  %3113 = vmatmul.msk.f32.vlgmr.msrb.gmra.mxu1 %vm355_vm1, %v331_v42  ;;  %v3203_v42 = vld [vmem:[%s5335_s1 + $0x110] sm:$0xff] }
  0xc0   : > { %3149 = vmatpush.msk.msrb.mxu0 %vm368_vm0, %v722_v46  ;;  %3154 = vmatpush.msk.msrb.mxu1 %vm368_vm0, %v723_v47 }
  0xc1   : > { %1260 = vperm.xlu2 %3533, %v1250_v45  }
  0xc2   : > { %3164 = vmatmul.msk.f32.vlgmr.msra.gmra.mxu2 %vm355_vm1, %v3159_v51  ;;  %3169 = vmatmul.msk.f32.vlgmr.msra.gmra.mxu3 %vm355_vm1, %v3159_v51  ;;  %v4181_v50 = vpop.f32.mrf.mxu2 }
  0xc4   : > { %v920_v59 = vpop.permute.xlu1 %919 }
  0xc5   : > { %v924_v62 = vsel %vm923_vm7, %v920_v59, %v922_v61  ;;  %v925_v63 = vsel %vm923_vm7, %v922_v61, %v920_v59 }
  0xc7   : > { %3109 = vmatmul.msk.f32.gmra.mxu0 %vm355_vm1, %v332_v48  ;;  %3114 = vmatmul.msk.f32.gmra.mxu1 %vm355_vm1, %v332_v48  ;;  %v3204_v48 = vld [vmem:[%s5335_s1 + $0x118] sm:$0xff] }
  0xca   : > { %3165 = vmatmul.msk.f32.gmra.mxu2 %vm355_vm1, %v3160_v55  ;;  %3170 = vmatmul.msk.f32.gmra.mxu3 %vm355_vm1, %v3160_v55 }
  0xcc   : > { %v1023_v1 = vpop.permute.xlu1 %1022  ;;  %v1021_v2 = vpop.permute.xlu0 %1020 }
  0xcd   : > { %v1025_v4 = vsel %vm1024_vm8, %v1021_v2, %v1023_v1  ;;  %v1026_v5 = vsel %vm1024_vm8, %v1023_v1, %v1021_v2 }
  0xce   : > { %3191 = vmatpush.msk.msrb.mxu2 %vm368_vm0, %v1025_v4  ;;  %3196 = vmatpush.msk.msrb.mxu3 %vm368_vm0, %v1026_v5 }
  0xcf   : > { %3122 = vmatmul.msk.f32.vlgmr.msra.gmra.mxu0 %vm355_vm1, %v3117_v54  ;;  %3127 = vmatmul.msk.f32.vlgmr.msra.gmra.mxu1 %vm355_vm1, %v3117_v54 }
  0xd0   : > { %3177 = vmatpush.msk.msra.mxu0 %vm368_vm0, %v924_v62  ;;  %3182 = vmatpush.msk.msra.mxu1 %vm368_vm0, %v925_v63 }
  0xd2   : > { %3166 = vmatmul.msk.f32.gmra.mxu2 %vm355_vm1, %v3161_v57  ;;  %3171 = vmatmul.msk.f32.gmra.mxu3 %vm355_vm1, %v3161_v57 }
  0xd4   : > { %v1124_v13 = vpop.permute.xlu0 %1123 }
  0xd5   : > { %v1126_v15 = vsel %vm1125_vm9, %v1122_v14, %v1124_v13  ;;  %v1127_v16 = vsel %vm1125_vm9, %v1124_v13, %v1122_v14  ;;  %v4213_v24 = vpop.permute.xlu1 %1238 }
  0xd6   : > { %5361 = vst [vmem:[#allocation9_spill] sm:$0xff] %v4213_v24 }
  0xd7   : > { %3123 = vmatmul.msk.f32.gmra.mxu0 %vm355_vm1, %v3118_v56  ;;  %3128 = vmatmul.msk.f32.gmra.mxu1 %vm355_vm1, %v3118_v56 }
  0xda   : > { %3167 = vmatmul.msk.f32.gmra.mxu2 %vm355_vm1, %v3162_v60  ;;  %3172 = vmatmul.msk.f32.gmra.mxu3 %vm355_vm1, %v3162_v60 }
  0xdf   : > { %3124 = vmatmul.msk.f32.gmra.mxu0 %vm355_vm1, %v3119_v58  ;;  %3129 = vmatmul.msk.f32.gmra.mxu1 %vm355_vm1, %v3119_v58 }
  0xe2   : > { %3192 = vmatmul.msk.f32.vlgmr.msrb.gmra.mxu2 %vm355_vm1, %v3187_v3  ;;  %3197 = vmatmul.msk.f32.vlgmr.msrb.gmra.mxu3 %vm355_vm1, %v3187_v3 }
  0xe7   : > { %3125 = vmatmul.msk.f32.gmra.mxu0 %vm355_vm1, %v3120_v0  ;;  %3130 = vmatmul.msk.f32.gmra.mxu1 %vm355_vm1, %v3120_v0 }
  0xea   : > { %3193 = vmatmul.msk.f32.gmra.mxu2 %vm355_vm1, %v3188_v7  ;;  %3198 = vmatmul.msk.f32.gmra.mxu3 %vm355_vm1, %v3188_v7 }
  0xef   : > { %3150 = vmatmul.msk.f32.vlgmr.msrb.gmra.mxu0 %vm355_vm1, %v3145_v6  ;;  %3155 = vmatmul.msk.f32.vlgmr.msrb.gmra.mxu1 %vm355_vm1, %v3145_v6 }
  0xf0   : > { %3205 = vmatpush.msk.msrb.mxu0 %vm368_vm0, %v1126_v15  ;;  %3210 = vmatpush.msk.msrb.mxu1 %vm368_vm0, %v1127_v16 }
  0xf2   : > { %3194 = vmatmul.msk.f32.gmra.mxu2 %vm355_vm1, %v3189_v9  ;;  %3199 = vmatmul.msk.f32.gmra.mxu3 %vm355_vm1, %v3189_v9 }
  0xf7   : > { %3151 = vmatmul.msk.f32.gmra.mxu0 %vm355_vm1, %v3146_v8  ;;  %3156 = vmatmul.msk.f32.gmra.mxu1 %vm355_vm1, %v3146_v8 }
  0xfa   : > { %3195 = vmatmul.msk.f32.gmra.mxu2 %vm355_vm1, %v3190_v11  ;;  %3200 = vmatmul.msk.f32.gmra.mxu3 %vm355_vm1, %v3190_v11 }
  0xff   : > { %3152 = vmatmul.msk.f32.gmra.mxu0 %vm355_vm1, %v3147_v10  ;;  %3157 = vmatmul.msk.f32.gmra.mxu1 %vm355_vm1, %v3147_v10 }
 0x107   : > { %3153 = vmatmul.msk.f32.gmra.mxu0 %vm355_vm1, %v3148_v12  ;;  %3158 = vmatmul.msk.f32.gmra.mxu1 %vm355_vm1, %v3148_v12 }
 0x10f   : > { %3178 = vmatmul.msk.f32.vlgmr.msra.gmra.mxu0 %vm355_vm1, %v3173_v19  ;;  %3183 = vmatmul.msk.f32.vlgmr.msra.gmra.mxu1 %vm355_vm1, %v3173_v19 }
 0x117   : > { %3179 = vmatmul.msk.f32.gmra.mxu0 %vm355_vm1, %v3174_v21  ;;  %3184 = vmatmul.msk.f32.gmra.mxu1 %vm355_vm1, %v3174_v21 }
 0x11c   : > { %v4119_v25 = vpop.f32.mrf.mxu0  ;;  %v4121_v26 = vpop.f32.mrf.mxu1 }
 0x11f   : > { %3180 = vmatmul.msk.f32.gmra.mxu0 %vm355_vm1, %v3175_v27  ;;  %3185 = vmatmul.msk.f32.gmra.mxu1 %vm355_vm1, %v3175_v27 }
 0x124   : > { %v4131_v29 = vpop.f32.mrf.mxu0  ;;  %v4133_v30 = vpop.f32.mrf.mxu1 }
 0x125   : > { %v692_v53 = vpop.f32.mrf.mxu3  ;;  %v663_v54 = vpop.f32.mrf.mxu2 }
 0x127   : > { %3181 = vmatmul.msk.f32.gmra.mxu0 %vm355_vm1, %v3176_v31  ;;  %3186 = vmatmul.msk.f32.gmra.mxu1 %vm355_vm1, %v3176_v31 }
 0x12c   : > { %v4140_v32 = vpop.f32.mrf.mxu0  ;;  %v4142_v33 = vpop.f32.mrf.mxu1 }
 0x12d   : > { %v695_v57 = vpop.f32.mrf.mxu3  ;;  %v666_v58 = vpop.f32.mrf.mxu2 }
 0x12f   : > { %3206 = vmatmul.msk.f32.vlgmr.msrb.gmra.mxu0 %vm355_vm1, %v3201_v34  ;;  %3211 = vmatmul.msk.f32.vlgmr.msrb.gmra.mxu1 %vm355_vm1, %v3201_v34 }
 0x134   : > { %v4152_v36 = vpop.f32.mrf.mxu0  ;;  %v4154_v37 = vpop.f32.mrf.mxu1 }
 0x135   : > { %v4185_v61 = vpop.f32.mrf.mxu3  ;;  %v4187_v62 = vpop.f32.mrf.mxu2 }
 0x137   : > { %3207 = vmatmul.msk.f32.gmra.mxu0 %vm355_vm1, %v3202_v38  ;;  %3212 = vmatmul.msk.f32.gmra.mxu1 %vm355_vm1, %v3202_v38 }
 0x13c   : > { %v498_v40 = vpop.f32.mrf.mxu1  ;;  %v469_v41 = vpop.f32.mrf.mxu0 }
 0x13d   : > { %v4193_v3 = vpop.f32.mrf.mxu2  ;;  %v4195_v4 = vpop.f32.mrf.mxu3  ;;  %v499_v27 = vadd.f32 %v498_v40, %v4121_v26  ;;  %v470_v28 = vadd.f32 %v469_v41, %v4119_v25 }
 0x13e   : > { %v4225_v26 = vpop.permute.xlu2 %1233  ;;  %v4227_v41 = vpop.permute.xlu0 %1270 }
 0x13f   : > { %3208 = vmatmul.msk.f32.gmra.mxu0 %vm355_vm1, %v3203_v42  ;;  %3213 = vmatmul.msk.f32.gmra.mxu1 %vm355_vm1, %v3203_v42 }
 0x144   : > { %v472_v46 = vpop.f32.mrf.mxu0  ;;  %v501_v47 = vpop.f32.mrf.mxu1 }
 0x145   : > { %v865_v7 = vpop.f32.mrf.mxu2  ;;  %v894_v8 = vpop.f32.mrf.mxu3  ;;  %v473_v22 = vadd.f32 %v472_v46, %v4131_v29 }
 0x147   : > { %3209 = vmatmul.msk.f32.gmra.mxu0 %vm355_vm1, %v3204_v48  ;;  %3214 = vmatmul.msk.f32.gmra.mxu1 %vm355_vm1, %v3204_v48 }
 0x14c   : > { %v562_v51 = vpop.f32.mrf.mxu0  ;;  %v591_v52 = vpop.f32.mrf.mxu1 }
 0x14d   : > { %v868_v11 = vpop.f32.mrf.mxu2  ;;  %v897_v12 = vpop.f32.mrf.mxu3  ;;  %v603_v31 = vadd.f32 %v562_v51, %v470_v28  ;;  %v604_v34 = vadd.f32 %v591_v52, %v499_v27 }
 0x14f   : > { %v705_v39 = vadd.f32 %v692_v53, %v604_v34  ;;  %v704_v42 = vadd.f32 %v663_v54, %v603_v31 }
 0x154   : > { %v565_v55 = vpop.f32.mrf.mxu0  ;;  %v594_v56 = vpop.f32.mrf.mxu1 }
 0x155   : > { %v4205_v15 = vpop.f32.mrf.mxu2  ;;  %v4207_v16 = vpop.f32.mrf.mxu3  ;;  %v605_v25 = vadd.f32 %v565_v55, %v473_v22 }
 0x157   : > { %v706_v29 = vadd.f32 %v666_v58, %v605_v25 }
 0x15c   : > { %v568_v59 = vpop.f32.mrf.mxu0  ;;  %v597_v60 = vpop.f32.mrf.mxu1 }
 0x15d   : > { %v4209_v21 = vpop.f32.mrf.mxu2  ;;  %v4211_v23 = vpop.f32.mrf.mxu3 }
 0x15e   : > { %5359 = vst [vmem:[#allocation7_spill] sm:$0xff] %v4209_v21 }
 0x15f   : > { %5360 = vst [vmem:[#allocation8_spill] sm:$0xff] %v4211_v23  ;;  %v502_v23 = vadd.f32 %v501_v47, %v4133_v30  ;;  %v505_v47 = vadd.f32 %v4167_v43, %v4142_v33 }
 0x161   : > { %v606_v40 = vadd.f32 %v594_v56, %v502_v23 }
 0x163   : > { %v707_v27 = vadd.f32 %v695_v57, %v606_v40 }
 0x164   : > { %v4189_v63 = vpop.f32.mrf.mxu0  ;;  %v4191_v0 = vpop.f32.mrf.mxu1 }
 0x165   : > { %v1067_v45 = vpop.f32.mrf.mxu2  ;;  %v1096_v48 = vpop.f32.mrf.mxu3 }
 0x16c   : > { %v764_v1 = vpop.f32.mrf.mxu0  ;;  %v793_v2 = vpop.f32.mrf.mxu1 }
 0x16d   : > { %v805_v21 = vadd.f32 %v764_v1, %v704_v42  ;;  %v806_v24 = vadd.f32 %v793_v2, %v705_v39  ;;  %v476_v1 = vadd.f32 %v4169_v44, %v4140_v32  ;;  %v608_v2 = vadd.f32 %v597_v60, %v505_v47  ;;  %v1070_v23 = vpop.f32.mrf.mxu2  ;;  %v1099_v28 = vpop.f32.mrf.mxu3 }
 0x16e   : > { %v1256_v44 = vpop.permute.xlu0 %1255  ;;  %v479_v39 = vadd.f32 %v4181_v50, %v4152_v36 }
 0x16f   : > { %v906_v53 = vadd.f32 %v865_v7, %v805_v21  ;;  %v907_v54 = vadd.f32 %v894_v8, %v806_v24  ;;  %v607_v56 = vadd.f32 %v568_v59, %v476_v1  ;;  %v4237_v8 = vpop.permute.xlu2 %1265  ;;  %v709_v43 = vadd.f32 %v4185_v61, %v608_v2 }
 0x170   : > { %v508_v24 = vadd.f32 %v4179_v49, %v4154_v37 }
 0x171   : > { %v708_v32 = vadd.f32 %v4187_v62, %v607_v56  ;;  %v609_v62 = vadd.f32 %v4189_v63, %v479_v39  ;;  %v5363_v56 = vld [vmem:[#allocation7_spill] sm:$0xff] }
 0x174   : > { %v767_v5 = vpop.f32.mrf.mxu0  ;;  %v796_v6 = vpop.f32.mrf.mxu1 }
 0x175   : > { %v807_v22 = vadd.f32 %v767_v5, %v706_v29  ;;  %v808_v55 = vadd.f32 %v796_v6, %v707_v27 }
 0x177   : > { %v1261_v27 = vpop.permute.xlu2 %1260 }
 0x17c   : > { %v4197_v9 = vpop.f32.mrf.mxu0  ;;  %v4199_v10 = vpop.f32.mrf.mxu1 }
 0x184   : > { %v4201_v13 = vpop.f32.mrf.mxu0  ;;  %v4203_v14 = vpop.f32.mrf.mxu1 }
 0x185   : > { %5358 = vst [vmem:[#allocation6_spill] sm:$0xff] %v4203_v14  ;;  %v4223_v14 = vpop.permute.xlu1 %1228 }
 0x18c   : > { %v966_v17 = vpop.f32.mrf.mxu0  ;;  %v995_v18 = vpop.f32.mrf.mxu1 }
 0x18d   : > { %v1007_v46 = vadd.f32 %v966_v17, %v906_v53  ;;  %v1008_v30 = vadd.f32 %v995_v18, %v907_v54  ;;  %v1224_v7 = vpop.permute.xlu1 %1223  ;;  %v908_v17 = vadd.f32 %v868_v11, %v807_v22  ;;  %v909_v18 = vadd.f32 %v897_v12, %v808_v55  ;;  %v1102_v54 = vpop.f32.mrf.mxu3 }
 0x18e   : > { %v809_v11 = vadd.f32 %v4197_v9, %v708_v32  ;;  %v810_v12 = vadd.f32 %v4199_v10, %v709_v43  ;;  %v1073_v10 = vpop.f32.mrf.mxu2  ;;  %v710_v53 = vadd.f32 %v4193_v3, %v609_v62 }
 0x18f   : > { %v1108_v31 = vadd.f32 %v1067_v45, %v1007_v46  ;;  %v1109_v34 = vadd.f32 %v1096_v48, %v1008_v30  ;;  %v5362_v30 = vld [vmem:[#allocation6_spill] sm:$0xff] }
 0x190   : > { %v910_v36 = vadd.f32 %v4205_v15, %v809_v11  ;;  %v911_v9 = vadd.f32 %v4207_v16, %v810_v12  ;;  %v811_v3 = vadd.f32 %v4201_v13, %v710_v53  ;;  %v5365_v11 = vld [vmem:[#allocation9_spill] sm:$0xff] }
 0x191   : > { %v1291_v53 = vld [vmem:[%s5338_s4 + $0x10] sm:$0xff] }
 0x192   : > { %v912_v2 = vadd.f32 %v5363_v56, %v811_v3  ;;  %v2633_v56 = vld [vmem:[%s5339_s5 + $0x28] sm:$0xff] }
 0x194   : > { %v969_v19 = vpop.f32.mrf.mxu0  ;;  %v998_v20 = vpop.f32.mrf.mxu1 }
 0x195   : > { %v1009_v59 = vadd.f32 %v969_v19, %v908_v17  ;;  %v1010_v60 = vadd.f32 %v998_v20, %v909_v18  ;;  %v610_v19 = vadd.f32 %v4191_v0, %v508_v24 }
 0x197   : > { %v1110_v20 = vadd.f32 %v1070_v23, %v1009_v59  ;;  %v1111_v45 = vadd.f32 %v1099_v28, %v1010_v60  ;;  %v711_v63 = vadd.f32 %v4195_v4, %v610_v19  ;;  %v5364_v23 = vld [vmem:[#allocation8_spill] sm:$0xff] }
 0x199   : > { %v812_v4 = vadd.f32 %v5362_v30, %v711_v63  ;;  %v2630_v63 = vld [vmem:[%s5339_s5 + $0x10] sm:$0xff] }
 0x19c   : > { %v4217_v35 = vpop.f32.mrf.mxu0  ;;  %v4219_v38 = vpop.f32.mrf.mxu1 }
 0x19d   : > { %v1011_v0 = vadd.f32 %v4217_v35, %v910_v36  ;;  %v1012_v29 = vadd.f32 %v4219_v38, %v911_v9  ;;  %v2629_v9 = vld [vmem:[%s5339_s5 + $0x8] sm:$0xff] }
 0x19f   : > { %v1112_v1 = vadd.f32 %v1073_v10, %v1011_v0  ;;  %v1113_v22 = vadd.f32 %v1102_v54, %v1012_v29  ;;  %v2696_v10 = vld [vmem:[%s5340_s6 + $0x20] sm:$0xff]  ;;  %v2634_v0 = vld [vmem:[%s5339_s5 + $0x30] sm:$0xff]  ;;  %v2697_v29 = vld [vmem:[%s5340_s6 + $0x28] sm:$0xff] }
 0x1a4   : > { %v4229_v51 = vpop.f32.mrf.mxu0  ;;  %v4231_v52 = vpop.f32.mrf.mxu1 }
 0x1a5   : > { %v1013_v13 = vadd.f32 %v4229_v51, %v912_v2 }
 0x1ac   : > { %v1168_v57 = vpop.f32.mrf.mxu0  ;;  %v1197_v58 = vpop.f32.mrf.mxu1 }
 0x1ad   : > { %v1209_v21 = vadd.f32 %v1168_v57, %v1108_v31  ;;  %v1210_v33 = vadd.f32 %v1197_v58, %v1109_v34 }
 0x1af   : > { %v1241_v5 = vmul.f32 %v1224_v7, %v1209_v21  ;;  %v1242_v6 = vmul.f32 %v1224_v7, %v1210_v33  ;;  %v1076_v21 = vpop.f32.mrf.mxu2  ;;  %v1105_v33 = vpop.f32.mrf.mxu3 }
 0x1b1   : > { %v4247_v42 = vadd.f32 %v1256_v44, %v1241_v5  ;;  %v4249_v61 = vadd.f32 %v1256_v44, %v1242_v6  ;;  %v1114_v44 = vadd.f32 %v1076_v21, %v1013_v13  ;;  %v2698_v21 = vld [vmem:[%s5340_s6 + $0x30] sm:$0xff] }
 0x1b3   : > { %v1281_v48 = vmax.f32 %v4247_v42, 0.0  ;;  %v1282_v37 = vmax.f32 %v4249_v61, 0.0  ;;  %v2693_v42 = vld [vmem:[%s5340_s6 + $0x8] sm:$0xff]  ;;  %v1289_v61 = vld [vmem:[%s5338_s4] sm:$0xff] }
 0x1b4   : > { %v1171_v49 = vpop.f32.mrf.mxu0  ;;  %v1200_v50 = vpop.f32.mrf.mxu1 }
 0x1b5   : > { %v1211_v25 = vadd.f32 %v1171_v49, %v1110_v20  ;;  %v1212_v40 = vadd.f32 %v1200_v50, %v1111_v45  ;;  %v4267_v16 = vpack.i.bf16 %v1282_v37, %v1281_v48  ;;  %v2694_v49 = vld [vmem:[%s5340_s6 + $0x10] sm:$0xff]  ;;  %v1290_v50 = vld [vmem:[%s5338_s4 + $0x8] sm:$0xff] }
 0x1b7   : > { %v1244_v46 = vmul.f32 %v4223_v14, %v1212_v40  ;;  %v1243_v15 = vmul.f32 %v4223_v14, %v1211_v25  ;;  %v913_v14 = vadd.f32 %v5364_v23, %v812_v4  ;;  %v2632_v40 = vld [vmem:[%s5339_s5 + $0x20] sm:$0xff] }
 0x1b9   : > { %v1275_v47 = vadd.f32 %v1261_v27, %v1243_v15  ;;  %v1276_v35 = vadd.f32 %v1261_v27, %v1244_v46  ;;  %v1014_v58 = vadd.f32 %v4231_v52, %v913_v14  ;;  %v1292_v46 = vld [vmem:[%s5338_s4 + $0x18] sm:$0xff] }
 0x1ba   : > { %v2695_v15 = vld [vmem:[%s5340_s6 + $0x18] sm:$0xff] }
 0x1bb   : > { %v1283_v55 = vmax.f32 %v1275_v47, 0.0  ;;  %v1284_v38 = vmax.f32 %v1276_v35, 0.0  ;;  %v1115_v59 = vadd.f32 %v1105_v33, %v1014_v58  ;;  %v5370_v35 = vld [vmem:[#allocation5_spill] sm:$0xff] }
 0x1bc   : > { %v1174_v28 = vpop.f32.mrf.mxu0  ;;  %v1203_v31 = vpop.f32.mrf.mxu1  ;;  %vm2828_vm11 = vcmp.eq.s32.totalorder %v5370_v35, 0  ;;  %vm2889_vm12 = vcmp.eq.s32.totalorder %v5370_v35, 1  ;;  %vm2950_vm13 = vcmp.eq.s32.totalorder %v5370_v35, 2  ;;  %vm3011_vm14 = vcmp.eq.s32.totalorder %v5370_v35, 3 }
 0x1bd   : > { %v1213_v34 = vadd.f32 %v1174_v28, %v1112_v1  ;;  %v1214_v7 = vadd.f32 %v1203_v31, %v1113_v22  ;;  %v4273_v57 = vpack.i.bf16 %v1284_v38, %v1283_v55 }
 0x1bf   : > { %v1245_v17 = vmul.f32 %v4225_v26, %v1213_v34  ;;  %v1246_v18 = vmul.f32 %v4225_v26, %v1214_v7  ;;  %3541 = vrot.lane.b32.xlu0 %v4273_v57, %s3759_s26  ;;  %v1294_v7 = vld [vmem:[%s5338_s4 + $0x28] sm:$0xff] }
 0x1c1   : > { %v1277_v43 = vadd.f32 %v4237_v8, %v1245_v17  ;;  %v1278_v32 = vadd.f32 %v4237_v8, %v1246_v18 }
 0x1c3   : > { %v1285_v60 = vmax.f32 %v1277_v43, 0.0  ;;  %v1286_v5 = vmax.f32 %v1278_v32, 0.0 }
 0x1c4   : > { %v1177_v51 = vpop.f32.mrf.mxu0  ;;  %v1206_v6 = vpop.f32.mrf.mxu1 }
 0x1c5   : > { %v1215_v52 = vadd.f32 %v1177_v51, %v1114_v44  ;;  %v1216_v24 = vadd.f32 %v1206_v6, %v1115_v59  ;;  %v3535_v39 = vpack.i.bf16 %v1286_v5, %v1285_v60 }
 0x1c7   : > { %v1247_v26 = vmul.f32 %v5365_v11, %v1215_v52  ;;  %v1248_v12 = vmul.f32 %v5365_v11, %v1216_v24  ;;  %3536 = vrot.lane.b32.xlu2 %v3535_v39, %s3759_s26  ;;  %3556 = vrot.lane.b32.xlu0 %v3535_v39, %s3760_s27  ;;  %v3215_v24 = vld [vmem:[%s5338_s4 + $0x40] sm:$0xff] }
 0x1c9   : > { %v1279_v62 = vadd.f32 %v4227_v41, %v1247_v26  ;;  %v1280_v8 = vadd.f32 %v4227_v41, %v1248_v12  ;;  %v2628_v41 = vld [vmem:[%s5339_s5] sm:$0xff] }
 0x1cb   : > { %v1287_v19 = vmax.f32 %v1279_v62, 0.0  ;;  %v1288_v20 = vmax.f32 %v1280_v8, 0.0  ;;  %v1295_v62 = vld [vmem:[%s5338_s4 + $0x30] sm:$0xff] }
 0x1cd   : > { %1473 = vmatpush.msra.mxu0 %v1287_v19  ;;  %1514 = vmatpush.msra.mxu1 %v1288_v20  ;;  %v3565_v45 = vpack.i.bf16 %v1288_v20, %v1287_v19 }
 0x1cf   : > { %1515 = vmatpush.msra.mxu1 %v1286_v5  ;;  %3566 = vrot.lane.b32.xlu2 %v3565_v45, %s3760_s27 }
 0x1d0   : > { %3546 = vrot.lane.b32.xlu1 %v3565_v45, %s3759_s26  ;;  %1474 = vmatpush.msra.mxu0 %v1285_v60 }
 0x1d1   : > { %3581 = vrot.lane.b32.xlu0 %v4273_v57, %s3762_s29  ;;  %1516 = vmatpush.msra.mxu1 %v1284_v38  ;;  %v1293_v38 = vld [vmem:[%s5338_s4 + $0x20] sm:$0xff] }
 0x1d2   : > { %1475 = vmatpush.msra.mxu0 %v1283_v55  ;;  %v2635_v55 = vld [vmem:[%s5339_s5 + $0x38] sm:$0xff] }
 0x1d3   : > { %1517 = vmatpush.msra.mxu1 %v1282_v37  ;;  %v2631_v37 = vld [vmem:[%s5339_s5 + $0x18] sm:$0xff] }
 0x1d4   : > { %1476 = vmatpush.msra.mxu0 %v1281_v48  ;;  %3247 = vmatmul.msk.f32.vlgmr.msra.gmra.mxu1 %vm1330_vm10, %v1289_v61  ;;  %v2692_v48 = vld [vmem:[%s5340_s6] sm:$0xff] }
 0x1d5   : > { %3239 = vmatmul.msk.f32.vlgmr.msra.gmra.mxu0 %vm1330_vm10, %v1289_v61 }
 0x1d7   : > { %3571 = vrot.lane.b32.xlu2 %v4267_v16, %s3760_s27 }
 0x1d8   : > { %3551 = vrot.lane.b32.xlu1 %v4267_v16, %s3759_s26  ;;  %s5367_s26 = smov 110  }
 0x1d9   : > { %3591 = vrot.lane.b32.xlu0 %v3565_v45, %s3762_s29 }
 0x1dc   : > { %3248 = vmatmul.msk.f32.gmra.mxu1 %vm1330_vm10, %v1290_v50 }
 0x1dd   : > { %3240 = vmatmul.msk.f32.gmra.mxu0 %vm1330_vm10, %v1290_v50 }
 0x1df   : > { %3596 = vrot.lane.b32.xlu2 %v3565_v45, %s3761_s28 }
 0x1e0   : > { %3561 = vrot.lane.b32.xlu1 %v4273_v57, %s3760_s27  ;;  %s5368_s27 = smov 95  }
 0x1e1   : > { %3606 = vrot.lane.b32.xlu0 %v4273_v57, %s3761_s28 }
 0x1e4   : > { %3249 = vmatmul.msk.f32.gmra.mxu1 %vm1330_vm10, %v1291_v53 }
 0x1e5   : > { %3241 = vmatmul.msk.f32.gmra.mxu0 %vm1330_vm10, %v1291_v53 }
 0x1e7   : > { %3601 = vrot.lane.b32.xlu2 %v4267_v16, %s3762_s29 }
 0x1e8   : > { %3576 = vrot.lane.b32.xlu1 %v3535_v39, %s3762_s29  ;;  %s5369_s29 = smov 94  }
 0x1e9   : > { %3616 = vrot.lane.b32.xlu0 %v3535_v39, %s5366_s23 }
 0x1ec   : > { %3250 = vmatmul.msk.f32.gmra.mxu1 %vm1330_vm10, %v1292_v46 }
 0x1ed   : > { %3242 = vmatmul.msk.f32.gmra.mxu0 %vm1330_vm10, %v1292_v46 }
 0x1ef   : > { %3621 = vrot.lane.b32.xlu2 %v4273_v57, %s5366_s23 }
 0x1f0   : > { %3586 = vrot.lane.b32.xlu1 %v3535_v39, %s3761_s28 }
 0x1f1   : > { %3626 = vrot.lane.b32.xlu0 %v3535_v39, %s5367_s26 }
 0x1f4   : > { %3251 = vmatmul.msk.f32.gmra.mxu1 %vm1330_vm10, %v1293_v38 }
 0x1f5   : > { %3243 = vmatmul.msk.f32.gmra.mxu0 %vm1330_vm10, %v1293_v38 }
 0x1f7   : > { %3631 = vrot.lane.b32.xlu2 %v3565_v45, %s5366_s23 }
 0x1f8   : > { %3611 = vrot.lane.b32.xlu1 %v4267_v16, %s3761_s28 }
 0x1f9   : > { %3651 = vrot.lane.b32.xlu0 %v4267_v16, %s5367_s26 }
 0x1fc   : > { %3252 = vmatmul.msk.f32.gmra.mxu1 %vm1330_vm10, %v1294_v7 }
 0x1fd   : > { %3244 = vmatmul.msk.f32.gmra.mxu0 %vm1330_vm10, %v1294_v7 }
 0x1ff   : > { %3646 = vrot.lane.b32.xlu2 %v4273_v57, %s5367_s26 }
 0x200   : > { %3636 = vrot.lane.b32.xlu1 %v3565_v45, %s5367_s26 }
 0x201   : > { %3676 = vrot.lane.b32.xlu0 %v3565_v45, %s5368_s27 }
 0x204   : > { %3253 = vmatmul.msk.f32.gmra.mxu1 %vm1330_vm10, %v1295_v62 }
 0x205   : > { %3245 = vmatmul.msk.f32.gmra.mxu0 %vm1330_vm10, %v1295_v62 }
 0x207   : > { %3656 = vrot.lane.b32.xlu2 %v3535_v39, %s5369_s29 }
 0x208   : > { %3641 = vrot.lane.b32.xlu1 %v4267_v16, %s5366_s23 }
 0x209   : > { %3681 = vrot.lane.b32.xlu0 %v4267_v16, %s5369_s29 }
 0x20f   : > { %3666 = vrot.lane.b32.xlu2 %v3535_v39, %s5368_s27 }
 0x210   : > { %3661 = vrot.lane.b32.xlu1 %v4273_v57, %s5369_s29 }
 0x211   : > { %2638 = vperm.xlu0 %3534, %v2628_v41  }
 0x217   : > { %3691 = vrot.lane.b32.xlu2 %v4267_v16, %s5368_s27  ;;  %v2699_v16 = vld [vmem:[%s5340_s6 + $0x38] sm:$0xff] }
 0x218   : > { %3671 = vrot.lane.b32.xlu1 %v3565_v45, %s5369_s29  ;;  %s3028_s29 = scalar_lea.hbm %s5343_s9, %s3839_s13  ;;  %s3020_s13 = scalar_lea.sflag [#allocation3], %s323_s22 }
 0x219   : > { %2707 = vperm.xlu0 %3534, %v2693_v42  }
 0x21f   : > { %2702 = vperm.xlu2 %3533, %v2692_v48  }
 0x220   : > { %3686 = vrot.lane.b32.xlu1 %v4273_v57, %s5368_s27 }
 0x221   : > { %2653 = vperm.xlu0 %3534, %v2631_v37   ;;  %v4354_v36 = vpop.permute.xlu2 %3536 }
 0x222   : > { %v3539_v23 = vunpack.i.h.bf16 %v4354_v36  ;;  %v3538_v14 = vunpack.i.l.bf16 %v4354_v36 }
 0x224   : > { %v1315_v33 = vsel %vm347_vm2, %v3538_v14, %v3539_v23  ;;  %v1319_v43 = vsel %vm347_vm2, %v3539_v23, %v3538_v14 }
 0x227   : > { %2712 = vperm.xlu2 %3533, %v2694_v49  }
 0x228   : > { %2643 = vperm.xlu1 %3532, %v2629_v9  }
 0x229   : > { %2722 = vperm.xlu0 %3534, %v2696_v10   ;;  %v4370_v25 = vpop.permute.xlu2 %3566  ;;  %v3216_v10 = vld [vmem:[%s5338_s4 + $0x48] sm:$0xff] }
 0x22a   : > { %v3569_v60 = vunpack.i.h.bf16 %v4370_v25  ;;  %v3568_v5 = vunpack.i.l.bf16 %v4370_v25 }
 0x22c   : > { %v1562_v8 = vsel %vm519_vm4, %v3568_v5, %v3569_v60  ;;  %v1566_v19 = vsel %vm519_vm4, %v3569_v60, %v3568_v5  ;;  %v3219_v5 = vld [vmem:[%s5338_s4 + $0x60] sm:$0xff] }
 0x22f   : > { %2658 = vperm.xlu2 %3533, %v2632_v40  }
 0x230   : > { %2648 = vperm.xlu1 %3532, %v2630_v63  }
 0x231   : > { %2668 = vperm.xlu0 %3534, %v2634_v0   ;;  %v3542_v54 = vpop.permute.xlu0 %3541  ;;  %v4386_v27 = vpop.permute.xlu2 %3571  ;;  %v1296_v0 = vld [vmem:[%s5338_s4 + $0x38] sm:$0xff] }
 0x232   : > { %v3544_v57 = vunpack.i.h.bf16 %v3542_v54  ;;  %v3543_v13 = vunpack.i.l.bf16 %v3542_v54  ;;  %v3574_v61 = vunpack.i.h.bf16 %v4386_v27  ;;  %v3573_v48 = vunpack.i.l.bf16 %v4386_v27  ;;  %3246 = vmatmul.msk.f32.gmra.mxu0 %vm1330_vm10, %v1296_v0  ;;  %3254 = vmatmul.msk.f32.gmra.mxu1 %vm1330_vm10, %v1296_v0 }
 0x234   : > { %v1314_v32 = vsel %vm347_vm2, %v3543_v13, %v3544_v57  ;;  %v1318_v44 = vsel %vm347_vm2, %v3544_v57, %v3543_v13  ;;  %v1559_v53 = vsel %vm519_vm4, %v3573_v48, %v3574_v61  ;;  %v1563_v63 = vsel %vm519_vm4, %v3574_v61, %v3573_v48 }
 0x237   : > { %2727 = vperm.xlu2 %3533, %v2697_v29  }
 0x238   : > { %2717 = vperm.xlu1 %3532, %v2695_v15  }
 0x239   : > { %2737 = vperm.xlu0 %3534, %v2699_v16   ;;  %v4402_v3 = vpop.permute.xlu0 %3556  ;;  %v3597_v30 = vpop.permute.xlu2 %3596 }
 0x23a   : > { %v3599_v4 = vunpack.i.h.bf16 %v3597_v30  ;;  %v3598_v47 = vunpack.i.l.bf16 %v3597_v30  ;;  %v3559_v39 = vunpack.i.h.bf16 %v4402_v3  ;;  %v3558_v11 = vunpack.i.l.bf16 %v4402_v3 }
 0x23c   : > { %v1717_v1 = vsel %vm620_vm3, %v3598_v47, %v3599_v4  ;;  %v1721_v22 = vsel %vm620_vm3, %v3599_v4, %v3598_v47  ;;  %v1561_v45 = vsel %vm519_vm4, %v3558_v11, %v3559_v39  ;;  %v1565_v41 = vsel %vm519_vm4, %v3559_v39, %v3558_v11  ;;  %v3217_v47 = vld [vmem:[%s5338_s4 + $0x50] sm:$0xff] }
 0x23d   : > { %1767 = vmatpush.msrb.mxu0 %v1717_v1  ;;  %1808 = vmatpush.msrb.mxu1 %v1721_v22 }
 0x23f   : > { %2673 = vperm.xlu2 %3533, %v2635_v55  }
 0x240   : > { %2663 = vperm.xlu1 %3532, %v2633_v56  }
 0x241   : > { %v4430_v18 = vpop.permute.xlu2 %3601 }
 0x242   : > { %v3547_v2 = vpop.permute.xlu1 %3546  ;;  %v3604_v1 = vunpack.i.h.bf16 %v4430_v18  ;;  %v3603_v22 = vunpack.i.l.bf16 %v4430_v18 }
 0x243   : > { %v3549_v28 = vunpack.i.h.bf16 %v3547_v2  ;;  %v3548_v31 = vunpack.i.l.bf16 %v3547_v2  ;;  %v4421_v34 = vpop.permute.xlu0 %3581 }
 0x244   : > { %v3584_v15 = vunpack.i.h.bf16 %v4421_v34  ;;  %v3583_v16 = vunpack.i.l.bf16 %v4421_v34  ;;  %v1869_v23 = vsel %vm721_vm5, %v3603_v22, %v3604_v1  ;;  %v1873_v14 = vsel %vm721_vm5, %v3604_v1, %v3603_v22  ;;  %v3222_v22 = vld [vmem:[%s5338_s4 + $0x78] sm:$0xff] }
 0x245   : > { %v1316_v58 = vsel %vm347_vm2, %v3548_v31, %v3549_v28  ;;  %v1320_v17 = vsel %vm347_vm2, %v3549_v28, %v3548_v31 }
 0x246   : > { %1367 = vmatpush.msra.mxu2 %v1316_v58  ;;  %1408 = vmatpush.msra.mxu3 %v1320_v17  ;;  %v1870_v56 = vsel %vm721_vm5, %v3583_v16, %v3584_v15  ;;  %v1874_v2 = vsel %vm721_vm5, %v3584_v15, %v3583_v16  ;;  %v3218_v17 = vld [vmem:[%s5338_s4 + $0x58] sm:$0xff]  ;;  %v3221_v16 = vld [vmem:[%s5338_s4 + $0x70] sm:$0xff] }
 0x248   : > { %1368 = vmatpush.msra.mxu2 %v1315_v33  ;;  %1409 = vmatpush.msra.mxu3 %v1319_v43 }
 0x249   : > { %2732 = vperm.xlu1 %3532, %v2698_v21   ;;  %v4465_v20 = vpop.permute.xlu2 %3621 }
 0x24a   : > { %1369 = vmatpush.msra.mxu2 %v1314_v32  ;;  %1410 = vmatpush.msra.mxu3 %v1318_v44  ;;  %v3552_v59 = vpop.permute.xlu1 %3551 }
 0x24b   : > { %v3592_v51 = vpop.permute.xlu0 %3591  ;;  %v3554_v6 = vunpack.i.h.bf16 %v3552_v59  ;;  %v3553_v52 = vunpack.i.l.bf16 %v3552_v59 }
 0x24c   : > { %v3594_v50 = vunpack.i.h.bf16 %v3592_v51  ;;  %v3593_v9 = vunpack.i.l.bf16 %v3592_v51 }
 0x24d   : > { %v1313_v26 = vsel %vm347_vm2, %v3553_v52, %v3554_v6  ;;  %v1317_v12 = vsel %vm347_vm2, %v3554_v6, %v3553_v52  ;;  %v3279_v52 = vld [vmem:[%s5338_s4 + $0xc0] sm:$0xff] }
 0x24e   : > { %1370 = vmatpush.msra.mxu2 %v1313_v26  ;;  %1411 = vmatpush.msra.mxu3 %v1317_v12  ;;  %v1872_v54 = vsel %vm721_vm5, %v3593_v9, %v3594_v50  ;;  %v1876_v27 = vsel %vm721_vm5, %v3594_v50, %v3593_v9 }
 0x24f   : > { %3223 = vmatmul.msk.f32.vlgmr.msra.gmra.mxu2 %vm1330_vm10, %v3215_v24  ;;  %3231 = vmatmul.msk.f32.vlgmr.msra.gmra.mxu3 %vm1330_vm10, %v3215_v24 }
 0x250   : > { %1612 = vmatpush.msrb.mxu2 %v1562_v8  ;;  %1653 = vmatpush.msrb.mxu3 %v1566_v19  ;;  %v3220_v8 = vld [vmem:[%s5338_s4 + $0x68] sm:$0xff] }
 0x251   : > { %v4497_v29 = vpop.permute.xlu2 %3631 }
 0x252   : > { %1613 = vmatpush.msrb.mxu2 %v1561_v45  ;;  %1654 = vmatpush.msrb.mxu3 %v1565_v41  ;;  %v3562_v42 = vpop.permute.xlu1 %3561 }
 0x253   : > { %v4475_v37 = vpop.permute.xlu0 %3606  ;;  %v3564_v36 = vunpack.i.h.bf16 %v3562_v42  ;;  %v3563_v49 = vunpack.i.l.bf16 %v3562_v42 }
 0x254   : > { %v3609_v31 = vunpack.i.h.bf16 %v4475_v37  ;;  %v3608_v34 = vunpack.i.l.bf16 %v4475_v37 }
 0x255   : > { %v1560_v25 = vsel %vm519_vm4, %v3563_v49, %v3564_v36  ;;  %v1564_v40 = vsel %vm519_vm4, %v3564_v36, %v3563_v49 }
 0x256   : > { %1614 = vmatpush.msrb.mxu2 %v1560_v25  ;;  %1655 = vmatpush.msrb.mxu3 %v1564_v40  ;;  %v1715_v33 = vsel %vm620_vm3, %v3608_v34, %v3609_v31  ;;  %v1719_v43 = vsel %vm620_vm3, %v3609_v31, %v3608_v34  ;;  %v3624_v31 = vunpack.i.h.bf16 %v4465_v20  ;;  %v3623_v34 = vunpack.i.l.bf16 %v4465_v20 }
 0x257   : > { %3224 = vmatmul.msk.f32.gmra.mxu2 %vm1330_vm10, %v3216_v10  ;;  %3232 = vmatmul.msk.f32.gmra.mxu3 %vm1330_vm10, %v3216_v10 }
 0x258   : > { %1615 = vmatpush.msrb.mxu2 %v1559_v53  ;;  %1656 = vmatpush.msrb.mxu3 %v1563_v63 }
 0x259   : > { %v3647_v58 = vpop.permute.xlu2 %3646 }
 0x25a   : > { %1922 = vmatpush.msra.mxu2 %v1872_v54  ;;  %1963 = vmatpush.msra.mxu3 %v1876_v27  ;;  %v3577_v46 = vpop.permute.xlu1 %3576  ;;  %v3649_v19 = vunpack.i.h.bf16 %v3647_v58  ;;  %v3648_v45 = vunpack.i.l.bf16 %v3647_v58 }
 0x25b   : > { %v4503_v3 = vpop.permute.xlu0 %3616  ;;  %v3579_v30 = vunpack.i.h.bf16 %v3577_v46  ;;  %v3578_v4 = vunpack.i.l.bf16 %v3577_v46 }
 0x25c   : > { %v2025_v25 = vsel %vm822_vm6, %v3648_v45, %v3649_v19  ;;  %v2029_v40 = vsel %vm822_vm6, %v3649_v19, %v3648_v45  ;;  %v3285_v19 = vld [vmem:[%s5338_s4 + $0xf0] sm:$0xff]  ;;  %v3259_v45 = vld [vmem:[%s5338_s4 + $0xa0] sm:$0xff] }
 0x25d   : > { %v1871_v55 = vsel %vm721_vm5, %v3578_v4, %v3579_v30  ;;  %v1875_v38 = vsel %vm721_vm5, %v3579_v30, %v3578_v4 }
 0x25e   : > { %1923 = vmatpush.msra.mxu2 %v1871_v55  ;;  %1964 = vmatpush.msra.mxu3 %v1875_v38  ;;  %v3281_v55 = vld [vmem:[%s5338_s4 + $0xd0] sm:$0xff] }
 0x25f   : > { %3225 = vmatmul.msk.f32.gmra.mxu2 %vm1330_vm10, %v3217_v47  ;;  %3233 = vmatmul.msk.f32.gmra.mxu3 %vm1330_vm10, %v3217_v47  ;;  %v3280_v47 = vld [vmem:[%s5338_s4 + $0xc8] sm:$0xff] }
 0x260   : > { %1924 = vmatpush.msra.mxu2 %v1870_v56  ;;  %1965 = vmatpush.msra.mxu3 %v1874_v2  ;;  %v3634_v56 = vunpack.i.h.bf16 %v4497_v29  ;;  %v3633_v2 = vunpack.i.l.bf16 %v4497_v29 }
 0x261   : > { %v4549_v24 = vpop.permute.xlu2 %3656 }
 0x262   : > { %v3587_v28 = vpop.permute.xlu1 %3586  ;;  %1925 = vmatpush.msra.mxu2 %v1869_v23  ;;  %1966 = vmatpush.msra.mxu3 %v1873_v14  ;;  %v3255_v23 = vld [vmem:[%s5338_s4 + $0x80] sm:$0xff]  ;;  %v3619_v14 = vunpack.i.h.bf16 %v4503_v3  ;;  %v2186_v29 = vsel %vm923_vm7, %v3634_v56, %v3633_v2 }
 0x263   : > { %v3627_v7 = vpop.permute.xlu0 %3626  ;;  %v3589_v57 = vunpack.i.h.bf16 %v3587_v28  ;;  %v3588_v13 = vunpack.i.l.bf16 %v3587_v28  ;;  %v3618_v28 = vunpack.i.l.bf16 %v4503_v3  ;;  %v3282_v3 = vld [vmem:[%s5338_s4 + $0xd8] sm:$0xff] }
 0x264   : > { %v3629_v11 = vunpack.i.h.bf16 %v3627_v7  ;;  %v3628_v26 = vunpack.i.l.bf16 %v3627_v7  ;;  %v2182_v7 = vsel %vm923_vm7, %v3633_v2, %v3634_v56 }
 0x265   : > { %v1716_v18 = vsel %vm620_vm3, %v3588_v13, %v3589_v57  ;;  %v1720_v21 = vsel %vm620_vm3, %v3589_v57, %v3588_v13  ;;  %v2181_v58 = vsel %vm923_vm7, %v3618_v28, %v3619_v14 }
 0x266   : > { %1768 = vmatpush.msrb.mxu0 %v1716_v18  ;;  %1809 = vmatpush.msrb.mxu1 %v1720_v21  ;;  %v2026_v36 = vsel %vm822_vm6, %v3628_v26, %v3629_v11  ;;  %v2030_v49 = vsel %vm822_vm6, %v3629_v11, %v3628_v26  ;;  %v3283_v26 = vld [vmem:[%s5338_s4 + $0xe0] sm:$0xff] }
 0x267   : > { %3226 = vmatmul.msk.f32.gmra.mxu2 %vm1330_vm10, %v3218_v17  ;;  %3234 = vmatmul.msk.f32.gmra.mxu3 %vm1330_vm10, %v3218_v17  ;;  %v2185_v17 = vsel %vm923_vm7, %v3619_v14, %v3618_v28 }
 0x268   : > { %1769 = vmatpush.msrb.mxu0 %v1715_v33  ;;  %1810 = vmatpush.msrb.mxu1 %v1719_v43  ;;  %v2180_v43 = vsel %vm923_vm7, %v3623_v34, %v3624_v31 }
 0x269   : > { %v3667_v50 = vpop.permute.xlu2 %3666 }
 0x26a   : > { %v3612_v32 = vpop.permute.xlu1 %3611  ;;  %v3669_v63 = vunpack.i.h.bf16 %v3667_v50  ;;  %v3668_v0 = vunpack.i.l.bf16 %v3667_v50 }
 0x26b   : > { %v3652_v44 = vpop.permute.xlu0 %3651  ;;  %v3614_v59 = vunpack.i.h.bf16 %v3612_v32  ;;  %v3613_v60 = vunpack.i.l.bf16 %v3612_v32  ;;  %v2184_v32 = vsel %vm923_vm7, %v3624_v31, %v3623_v34 }
 0x26c   : > { %v3654_v48 = vunpack.i.h.bf16 %v3652_v44  ;;  %v3653_v37 = vunpack.i.l.bf16 %v3652_v44  ;;  %v2336_v30 = vsel %vm1024_vm8, %v3668_v0, %v3669_v63  ;;  %v2340_v4 = vsel %vm1024_vm8, %v3669_v63, %v3668_v0 }
 0x26d   : > { %v1714_v51 = vsel %vm620_vm3, %v3613_v60, %v3614_v59  ;;  %v1718_v6 = vsel %vm620_vm3, %v3614_v59, %v3613_v60 }
 0x26e   : > { %1770 = vmatpush.msrb.mxu0 %v1714_v51  ;;  %1811 = vmatpush.msrb.mxu1 %v1718_v6  ;;  %v2024_v54 = vsel %vm822_vm6, %v3653_v37, %v3654_v48  ;;  %v2028_v27 = vsel %vm822_vm6, %v3654_v48, %v3653_v37  ;;  %v1519_v48 = vpop.f32.mrf.mxu1  ;;  %v3327_v37 = vld [vmem:[%s5338_s4 + $0x140] sm:$0xff] }
 0x26f   : > { %3227 = vmatmul.msk.f32.gmra.mxu2 %vm1330_vm10, %v3219_v5  ;;  %3235 = vmatmul.msk.f32.gmra.mxu3 %vm1330_vm10, %v3219_v5 }
 0x270   : > { %3287 = vmatmul.msk.f32.vlgmr.msrb.gmra.mxu0 %vm1330_vm10, %v3279_v52  ;;  %3295 = vmatmul.msk.f32.vlgmr.msrb.gmra.mxu1 %vm1330_vm10, %v3279_v52  ;;  %v3256_v52 = vld [vmem:[%s5338_s4 + $0x88] sm:$0xff] }
 0x271   : > { %v3692_v57 = vpop.permute.xlu2 %3691 }
 0x272   : > { %v3637_v39 = vpop.permute.xlu1 %3636  ;;  %v3694_v44 = vunpack.i.h.bf16 %v3692_v57  ;;  %v3693_v59 = vunpack.i.l.bf16 %v3692_v57 }
 0x273   : > { %v3639_v12 = vunpack.i.h.bf16 %v3637_v39  ;;  %v3638_v62 = vunpack.i.l.bf16 %v3637_v39  ;;  %v3677_v41 = vpop.permute.xlu0 %3676 }
 0x274   : > { %v3679_v9 = vunpack.i.h.bf16 %v3677_v41  ;;  %v3678_v10 = vunpack.i.l.bf16 %v3677_v41  ;;  %v2334_v39 = vsel %vm1024_vm8, %v3693_v59, %v3694_v44  ;;  %v2338_v11 = vsel %vm1024_vm8, %v3694_v44, %v3693_v59  ;;  %v3286_v41 = vld [vmem:[%s5338_s4 + $0xf8] sm:$0xff]  ;;  %v3332_v59 = vld [vmem:[%s5338_s4 + $0x168] sm:$0xff] }
 0x275   : > { %v2027_v42 = vsel %vm822_vm6, %v3638_v62, %v3639_v12  ;;  %v2031_v61 = vsel %vm822_vm6, %v3639_v12, %v3638_v62  ;;  %v3257_v12 = vld [vmem:[%s5338_s4 + $0x90] sm:$0xff]  ;;  %v3284_v62 = vld [vmem:[%s5338_s4 + $0xe8] sm:$0xff] }
 0x276   : > { %2077 = vmatpush.msra.mxu0 %v2027_v42  ;;  %2118 = vmatpush.msra.mxu1 %v2031_v61  ;;  %v2337_v46 = vsel %vm1024_vm8, %v3678_v10, %v3679_v9  ;;  %v2341_v15 = vsel %vm1024_vm8, %v3679_v9, %v3678_v10  ;;  %v1478_v42 = vpop.f32.mrf.mxu0  ;;  %v3260_v61 = vld [vmem:[%s5338_s4 + $0xa8] sm:$0xff]  ;;  %v1522_v50 = vpop.f32.mrf.mxu1 }
 0x277   : > { %3228 = vmatmul.msk.f32.gmra.mxu2 %vm1330_vm10, %v3220_v8  ;;  %3236 = vmatmul.msk.f32.gmra.mxu3 %vm1330_vm10, %v3220_v8  ;;  %v3258_v8 = vld [vmem:[%s5338_s4 + $0x98] sm:$0xff]  ;;  %v3328_v9 = vld [vmem:[%s5338_s4 + $0x148] sm:$0xff] }
 0x278   : > { %2078 = vmatpush.msra.mxu0 %v2026_v36  ;;  %2119 = vmatpush.msra.mxu1 %v2030_v49  ;;  %v3261_v49 = vld [vmem:[%s5338_s4 + $0xb0] sm:$0xff] }
 0x279   : > { %3288 = vmatmul.msk.f32.gmra.mxu0 %vm1330_vm10, %v3280_v47  ;;  %3296 = vmatmul.msk.f32.gmra.mxu1 %vm1330_vm10, %v3280_v47 }
 0x27a   : > { %v4572_v53 = vpop.permute.xlu1 %3641  ;;  %2079 = vmatpush.msra.mxu0 %v2025_v25  ;;  %2120 = vmatpush.msra.mxu1 %v2029_v40  ;;  %v3262_v25 = vld [vmem:[%s5338_s4 + $0xb8] sm:$0xff] }
 0x27b   : > { %v3644_v13 = vunpack.i.h.bf16 %v4572_v53  ;;  %v3643_v20 = vunpack.i.l.bf16 %v4572_v53  ;;  %v3329_v53 = vld [vmem:[%s5338_s4 + $0x150] sm:$0xff] }
 0x27c   : > { %2080 = vmatpush.msra.mxu0 %v2024_v54  ;;  %2121 = vmatpush.msra.mxu1 %v2028_v27  ;;  %v3303_v27 = vld [vmem:[%s5338_s4 + $0x100] sm:$0xff] }
 0x27d   : > { %v2179_v60 = vsel %vm923_vm7, %v3643_v20, %v3644_v13  ;;  %v2183_v5 = vsel %vm923_vm7, %v3644_v13, %v3643_v20 }
 0x27e   : > { %2387 = vmatpush.msrb.mxu0 %v2337_v46  ;;  %2428 = vmatpush.msrb.mxu1 %v2341_v15  ;;  %v4702_v36 = vpop.f32.mrf.mxu0  ;;  %v4719_v40 = vpop.f32.mrf.mxu1  ;;  %v3659_v15 = vunpack.i.h.bf16 %v4549_v24 }
 0x27f   : > { %3229 = vmatmul.msk.f32.gmra.mxu2 %vm1330_vm10, %v3221_v16  ;;  %3237 = vmatmul.msk.f32.gmra.mxu3 %vm1330_vm10, %v3221_v16  ;;  %v3658_v16 = vunpack.i.l.bf16 %v4549_v24 }
 0x280   : > { %2388 = vmatpush.msrb.mxu0 %v2336_v30  ;;  %2429 = vmatpush.msrb.mxu1 %v2340_v4  ;;  %v3682_v30 = vpop.permute.xlu0 %3681 }
 0x281   : > { %3289 = vmatmul.msk.f32.gmra.mxu0 %vm1330_vm10, %v3281_v55  ;;  %3297 = vmatmul.msk.f32.gmra.mxu1 %vm1330_vm10, %v3281_v55  ;;  %v3684_v24 = vunpack.i.h.bf16 %v3682_v30  ;;  %v3683_v56 = vunpack.i.l.bf16 %v3682_v30  ;;  %v2495_v2 = vsel %vm1125_vm9, %v3659_v15, %v3658_v16 }
 0x282   : > { %v4596_v1 = vpop.permute.xlu1 %3661 }
 0x283   : > { %v3664_v4 = vunpack.i.h.bf16 %v4596_v1  ;;  %v3663_v47 = vunpack.i.l.bf16 %v4596_v1  ;;  %v2491_v1 = vsel %vm1125_vm9, %v3658_v16, %v3659_v15  ;;  %v2489_v13 = vsel %vm1125_vm9, %v3683_v56, %v3684_v24  ;;  %v3376_v15 = vld [vmem:[%s5338_s4 + $0x1c8] sm:$0xff] }
 0x284   : > { %v2493_v20 = vsel %vm1125_vm9, %v3684_v24, %v3683_v56 }
 0x285   : > { %v2490_v34 = vsel %vm1125_vm9, %v3663_v47, %v3664_v4 }
 0x286   : > { %v4714_v10 = vpop.f32.mrf.mxu0  ;;  %v4735_v46 = vpop.f32.mrf.mxu1 }
 0x287   : > { %3230 = vmatmul.msk.f32.gmra.mxu2 %vm1330_vm10, %v3222_v22  ;;  %3238 = vmatmul.msk.f32.gmra.mxu3 %vm1330_vm10, %v3222_v22 }
 0x289   : > { %3290 = vmatmul.msk.f32.gmra.mxu0 %vm1330_vm10, %v3282_v3  ;;  %3298 = vmatmul.msk.f32.gmra.mxu1 %vm1330_vm10, %v3282_v3  ;;  %v3304_v3 = vld [vmem:[%s5338_s4 + $0x108] sm:$0xff] }
 0x28a   : > { %v4608_v38 = vpop.permute.xlu1 %3671 }
 0x28b   : > { %v3674_v63 = vunpack.i.h.bf16 %v4608_v38  ;;  %v3673_v0 = vunpack.i.l.bf16 %v4608_v38  ;;  %v3330_v38 = vld [vmem:[%s5338_s4 + $0x158] sm:$0xff] }
 0x28d   : > { %v2492_v22 = vsel %vm1125_vm9, %v3673_v0, %v3674_v63  ;;  %v2496_v55 = vsel %vm1125_vm9, %v3674_v63, %v3673_v0 }
 0x28e   : > { %v4730_v54 = vpop.f32.mrf.mxu0  ;;  %v1531_v57 = vpop.f32.mrf.mxu1 }
 0x28f   : > { %3263 = vmatmul.msk.f32.vlgmr.msrb.gmra.mxu2 %vm1330_vm10, %v3255_v23  ;;  %3271 = vmatmul.msk.f32.vlgmr.msrb.gmra.mxu3 %vm1330_vm10, %v3255_v23 }
 0x290   : > { %2232 = vmatpush.msrb.mxu2 %v2182_v7  ;;  %2273 = vmatpush.msrb.mxu3 %v2186_v29  ;;  %v2494_v7 = vsel %vm1125_vm9, %v3664_v4, %v3663_v47 }
 0x291   : > { %3291 = vmatmul.msk.f32.gmra.mxu0 %vm1330_vm10, %v3283_v26  ;;  %3299 = vmatmul.msk.f32.gmra.mxu1 %vm1330_vm10, %v3283_v26  ;;  %v3333_v26 = vld [vmem:[%s5338_s4 + $0x170] sm:$0xff] }
 0x292   : > { %2233 = vmatpush.msrb.mxu2 %v2181_v58  ;;  %2274 = vmatpush.msrb.mxu3 %v2185_v17  ;;  %v3687_v18 = vpop.permute.xlu1 %3686  ;;  %v3331_v58 = vld [vmem:[%s5338_s4 + $0x160] sm:$0xff] }
 0x293   : > { %v3689_v21 = vunpack.i.h.bf16 %v3687_v18  ;;  %v3688_v33 = vunpack.i.l.bf16 %v3687_v18 }
 0x294   : > { %2234 = vmatpush.msrb.mxu2 %v2180_v43  ;;  %2275 = vmatpush.msrb.mxu3 %v2184_v32  ;;  %v3305_v32 = vld [vmem:[%s5338_s4 + $0x110] sm:$0xff] }
 0x295   : > { %v2335_v51 = vsel %vm1024_vm8, %v3688_v33, %v3689_v21  ;;  %v2339_v6 = vsel %vm1024_vm8, %v3689_v21, %v3688_v33 }
 0x296   : > { %2235 = vmatpush.msrb.mxu2 %v2179_v60  ;;  %2276 = vmatpush.msrb.mxu3 %v2183_v5  ;;  %v1490_v29 = vpop.f32.mrf.mxu0  ;;  %v1534_v44 = vpop.f32.mrf.mxu1 }
 0x297   : > { %2389 = vmatpush.msrb.mxu0 %v2335_v51  ;;  %2430 = vmatpush.msrb.mxu1 %v2339_v6 }
 0x298   : > { %3264 = vmatmul.msk.f32.gmra.mxu2 %vm1330_vm10, %v3256_v52  ;;  %3272 = vmatmul.msk.f32.gmra.mxu3 %vm1330_vm10, %v3256_v52 }
 0x299   : > { %2390 = vmatpush.msrb.mxu0 %v2334_v39  ;;  %2431 = vmatpush.msrb.mxu1 %v2338_v11  ;;  %v3306_v39 = vld [vmem:[%s5338_s4 + $0x118] sm:$0xff] }
 0x29a   : > { %3292 = vmatmul.msk.f32.gmra.mxu0 %vm1330_vm10, %v3284_v62  ;;  %3300 = vmatmul.msk.f32.gmra.mxu1 %vm1330_vm10, %v3284_v62 }
 0x29e   : > { %v1493_v43 = vpop.f32.mrf.mxu0  ;;  %v1537_v11 = vpop.f32.mrf.mxu1 }
 0x2a0   : > { %3265 = vmatmul.msk.f32.gmra.mxu2 %vm1330_vm10, %v3257_v12  ;;  %3273 = vmatmul.msk.f32.gmra.mxu3 %vm1330_vm10, %v3257_v12 }
 0x2a2   : > { %3293 = vmatmul.msk.f32.gmra.mxu0 %vm1330_vm10, %v3285_v19  ;;  %3301 = vmatmul.msk.f32.gmra.mxu1 %vm1330_vm10, %v3285_v19 }
 0x2a6   : > { %v1496_v52 = vpop.f32.mrf.mxu0 }
 0x2a8   : > { %3266 = vmatmul.msk.f32.gmra.mxu2 %vm1330_vm10, %v3258_v8  ;;  %3274 = vmatmul.msk.f32.gmra.mxu3 %vm1330_vm10, %v3258_v8 }
 0x2aa   : > { %3294 = vmatmul.msk.f32.gmra.mxu0 %vm1330_vm10, %v3286_v41  ;;  %3302 = vmatmul.msk.f32.gmra.mxu1 %vm1330_vm10, %v3286_v41 }
 0x2af   : > { %v1499_v41 = vpop.f32.mrf.mxu0 }
 0x2b0   : > { %3267 = vmatmul.msk.f32.gmra.mxu2 %vm1330_vm10, %v3259_v45  ;;  %3275 = vmatmul.msk.f32.gmra.mxu3 %vm1330_vm10, %v3259_v45  ;;  %v3307_v45 = vld [vmem:[%s5338_s4 + $0x120] sm:$0xff] }
 0x2b2   : > { %3335 = vmatmul.msk.f32.vlgmr.msra.gmra.mxu0 %vm1330_vm10, %v3327_v37  ;;  %3343 = vmatmul.msk.f32.vlgmr.msra.gmra.mxu1 %vm1330_vm10, %v3327_v37 }
 0x2b8   : > { %3268 = vmatmul.msk.f32.gmra.mxu2 %vm1330_vm10, %v3260_v61  ;;  %3276 = vmatmul.msk.f32.gmra.mxu3 %vm1330_vm10, %v3260_v61  ;;  %v3334_v61 = vld [vmem:[%s5338_s4 + $0x178] sm:$0xff] }
 0x2ba   : > { %3336 = vmatmul.msk.f32.gmra.mxu0 %vm1330_vm10, %v3328_v9  ;;  %3344 = vmatmul.msk.f32.gmra.mxu1 %vm1330_vm10, %v3328_v9 }
 0x2c0   : > { %3269 = vmatmul.msk.f32.gmra.mxu2 %vm1330_vm10, %v3261_v49  ;;  %3277 = vmatmul.msk.f32.gmra.mxu3 %vm1330_vm10, %v3261_v49 }
 0x2c2   : > { %3337 = vmatmul.msk.f32.gmra.mxu0 %vm1330_vm10, %v3329_v53  ;;  %3345 = vmatmul.msk.f32.gmra.mxu1 %vm1330_vm10, %v3329_v53 }
 0x2c8   : > { %3270 = vmatmul.msk.f32.gmra.mxu2 %vm1330_vm10, %v3262_v25  ;;  %3278 = vmatmul.msk.f32.gmra.mxu3 %vm1330_vm10, %v3262_v25  ;;  %v3375_v25 = vld [vmem:[%s5338_s4 + $0x1c0] sm:$0xff] }
 0x2ca   : > { %3338 = vmatmul.msk.f32.gmra.mxu0 %vm1330_vm10, %v3330_v38  ;;  %3346 = vmatmul.msk.f32.gmra.mxu1 %vm1330_vm10, %v3330_v38 }
 0x2d0   : > { %3311 = vmatmul.msk.f32.vlgmr.msra.gmra.mxu2 %vm1330_vm10, %v3303_v27  ;;  %3319 = vmatmul.msk.f32.vlgmr.msra.gmra.mxu3 %vm1330_vm10, %v3303_v27 }
 0x2d1   : > { %2542 = vmatpush.msra.mxu2 %v2492_v22  ;;  %2583 = vmatpush.msra.mxu3 %v2496_v55  ;;  %v3310_v22 = vld [vmem:[%s5338_s4 + $0x138] sm:$0xff]  ;;  %v3377_v55 = vld [vmem:[%s5338_s4 + $0x1d0] sm:$0xff] }
 0x2d2   : > { %v1372_v23 = vpop.f32.mrf.mxu2  ;;  %v1413_v14 = vpop.f32.mrf.mxu3  ;;  %3339 = vmatmul.msk.f32.gmra.mxu0 %vm1330_vm10, %v3331_v58  ;;  %3347 = vmatmul.msk.f32.gmra.mxu1 %vm1330_vm10, %v3331_v58 }
 0x2d3   : > { %2543 = vmatpush.msra.mxu2 %v2491_v1  ;;  %2584 = vmatpush.msra.mxu3 %v2495_v2  ;;  %v4756_v28 = vadd.f32 %v1478_v42, %v1372_v23  ;;  %v4758_v31 = vadd.f32 %v1519_v48, %v1413_v14  ;;  %v1540_v42 = vpop.f32.mrf.mxu1  ;;  %v3351_v14 = vld [vmem:[%s5338_s4 + $0x180] sm:$0xff] }
 0x2d5   : > { %2544 = vmatpush.msra.mxu2 %v2490_v34  ;;  %2585 = vmatpush.msra.mxu3 %v2494_v7  ;;  %v3378_v34 = vld [vmem:[%s5338_s4 + $0x1d8] sm:$0xff] }
 0x2d7   : > { %2545 = vmatpush.msra.mxu2 %v2489_v13  ;;  %2586 = vmatpush.msra.mxu3 %v2493_v20 }
 0x2d8   : > { %3312 = vmatmul.msk.f32.gmra.mxu2 %vm1330_vm10, %v3304_v3  ;;  %3320 = vmatmul.msk.f32.gmra.mxu3 %vm1330_vm10, %v3304_v3 }
 0x2da   : > { %v1375_v17 = vpop.f32.mrf.mxu2  ;;  %v1416_v18 = vpop.f32.mrf.mxu3  ;;  %3340 = vmatmul.msk.f32.gmra.mxu0 %vm1330_vm10, %v3332_v59  ;;  %3348 = vmatmul.msk.f32.gmra.mxu1 %vm1330_vm10, %v3332_v59  ;;  %v3353_v59 = vld [vmem:[%s5338_s4 + $0x190] sm:$0xff] }
 0x2db   : > { %v4779_v21 = vadd.f32 %v4702_v36, %v1375_v17  ;;  %v4781_v33 = vadd.f32 %v1522_v50, %v1416_v18  ;;  %v3308_v50 = vld [vmem:[%s5338_s4 + $0x128] sm:$0xff] }
 0x2dc   : > { %v3352_v18 = vld [vmem:[%s5338_s4 + $0x188] sm:$0xff] }
 0x2e0   : > { %3313 = vmatmul.msk.f32.gmra.mxu2 %vm1330_vm10, %v3305_v32  ;;  %3321 = vmatmul.msk.f32.gmra.mxu3 %vm1330_vm10, %v3305_v32 }
 0x2e2   : > { %v1378_v60 = vpop.f32.mrf.mxu2  ;;  %v1419_v5 = vpop.f32.mrf.mxu3  ;;  %3341 = vmatmul.msk.f32.gmra.mxu0 %vm1330_vm10, %v3333_v26  ;;  %3349 = vmatmul.msk.f32.gmra.mxu1 %vm1330_vm10, %v3333_v26 }
 0x2e3   : > { %v4794_v51 = vadd.f32 %v4714_v10, %v1378_v60  ;;  %v4797_v6 = vadd.f32 %v4719_v40, %v1419_v5 }
 0x2e8   : > { %3314 = vmatmul.msk.f32.gmra.mxu2 %vm1330_vm10, %v3306_v39  ;;  %3322 = vmatmul.msk.f32.gmra.mxu3 %vm1330_vm10, %v3306_v39 }
 0x2ea   : > { %v1381_v12 = vpop.f32.mrf.mxu2  ;;  %v1422_v62 = vpop.f32.mrf.mxu3  ;;  %3342 = vmatmul.msk.f32.gmra.mxu0 %vm1330_vm10, %v3334_v61  ;;  %3350 = vmatmul.msk.f32.gmra.mxu1 %vm1330_vm10, %v3334_v61 }
 0x2eb   : > { %v4810_v8 = vadd.f32 %v4730_v54, %v1381_v12  ;;  %v4813_v19 = vadd.f32 %v4735_v46, %v1422_v62  ;;  %v3309_v54 = vld [vmem:[%s5338_s4 + $0x130] sm:$0xff]  ;;  %v3354_v62 = vld [vmem:[%s5338_s4 + $0x198] sm:$0xff] }
 0x2ed   : > { %v1772_v9 = vpop.f32.mrf.mxu0  ;;  %v1813_v10 = vpop.f32.mrf.mxu1 }
 0x2f0   : > { %3315 = vmatmul.msk.f32.gmra.mxu2 %vm1330_vm10, %v3307_v45  ;;  %3323 = vmatmul.msk.f32.gmra.mxu3 %vm1330_vm10, %v3307_v45 }
 0x2f2   : > { %v1384_v48 = vpop.f32.mrf.mxu2  ;;  %v1425_v37 = vpop.f32.mrf.mxu3  ;;  %3383 = vmatmul.msk.f32.vlgmr.msrb.gmra.mxu0 %vm1330_vm10, %v3375_v25  ;;  %3391 = vmatmul.msk.f32.vlgmr.msrb.gmra.mxu1 %vm1330_vm10, %v3375_v25 }
 0x2f3   : > { %v4825_v36 = vadd.f32 %v1490_v29, %v1384_v48  ;;  %v4827_v49 = vadd.f32 %v1531_v57, %v1425_v37 }
 0x2f6   : > { %v1775_v27 = vpop.f32.mrf.mxu0  ;;  %v1816_v46 = vpop.f32.mrf.mxu1 }
 0x2f8   : > { %3316 = vmatmul.msk.f32.gmra.mxu2 %vm1330_vm10, %v3308_v50  ;;  %3324 = vmatmul.msk.f32.gmra.mxu3 %vm1330_vm10, %v3308_v50 }
 0x2fa   : > { %v1387_v40 = vpop.f32.mrf.mxu2  ;;  %v1428_v53 = vpop.f32.mrf.mxu3  ;;  %3384 = vmatmul.msk.f32.gmra.mxu0 %vm1330_vm10, %v3376_v15  ;;  %3392 = vmatmul.msk.f32.gmra.mxu1 %vm1330_vm10, %v3376_v15  ;;  %v3356_v15 = vld [vmem:[%s5338_s4 + $0x1a8] sm:$0xff] }
 0x2fb   : > { %v4839_v63 = vadd.f32 %v1493_v43, %v1387_v40  ;;  %v4841_v0 = vadd.f32 %v1534_v44, %v1428_v53  ;;  %v3382_v40 = vld [vmem:[%s5338_s4 + $0x1f8] sm:$0xff] }
 0x2fe   : > { %v1778_v38 = vpop.f32.mrf.mxu0  ;;  %v1819_v24 = vpop.f32.mrf.mxu1 }
 0x300   : > { %3317 = vmatmul.msk.f32.gmra.mxu2 %vm1330_vm10, %v3309_v54  ;;  %3325 = vmatmul.msk.f32.gmra.mxu3 %vm1330_vm10, %v3309_v54 }
 0x302   : > { %v1390_v16 = vpop.f32.mrf.mxu2  ;;  %v1431_v30 = vpop.f32.mrf.mxu3  ;;  %3385 = vmatmul.msk.f32.gmra.mxu0 %vm1330_vm10, %v3377_v55  ;;  %3393 = vmatmul.msk.f32.gmra.mxu1 %vm1330_vm10, %v3377_v55 }
 0x303   : > { %v4853_v4 = vadd.f32 %v1496_v52, %v1390_v16  ;;  %v4855_v47 = vadd.f32 %v1537_v11, %v1431_v30 }
 0x306   : > { %v1781_v13 = vpop.f32.mrf.mxu0  ;;  %v1822_v20 = vpop.f32.mrf.mxu1 }
 0x308   : > { %3318 = vmatmul.msk.f32.gmra.mxu2 %vm1330_vm10, %v3310_v22  ;;  %3326 = vmatmul.msk.f32.gmra.mxu3 %vm1330_vm10, %v3310_v22 }
 0x30a   : > { %v1393_v56 = vpop.f32.mrf.mxu2  ;;  %v1434_v1 = vpop.f32.mrf.mxu3  ;;  %3386 = vmatmul.msk.f32.gmra.mxu0 %vm1330_vm10, %v3378_v34  ;;  %3394 = vmatmul.msk.f32.gmra.mxu1 %vm1330_vm10, %v3378_v34 }
 0x30b   : > { %v4867_v2 = vadd.f32 %v1499_v41, %v1393_v56  ;;  %v4869_v23 = vadd.f32 %v1540_v42, %v1434_v1  ;;  %v3357_v56 = vld [vmem:[%s5338_s4 + $0x1b0] sm:$0xff] }
 0x30e   : > { %v1784_v52 = vpop.f32.mrf.mxu0  ;;  %v1825_v39 = vpop.f32.mrf.mxu1 }
 0x310   : > { %3359 = vmatmul.msk.f32.vlgmr.msrb.gmra.mxu2 %vm1330_vm10, %v3351_v14  ;;  %3367 = vmatmul.msk.f32.vlgmr.msrb.gmra.mxu3 %vm1330_vm10, %v3351_v14 }
 0x312   : > { %v1617_v7 = vpop.f32.mrf.mxu2  ;;  %v1658_v29 = vpop.f32.mrf.mxu3 }
 0x313   : > { %v1682_v3 = vadd.f32 %v1617_v7, %v4756_v28  ;;  %v1683_v57 = vadd.f32 %v1658_v29, %v4758_v31  ;;  %v3379_v28 = vld [vmem:[%s5338_s4 + $0x1e0] sm:$0xff]  ;;  %v3358_v29 = vld [vmem:[%s5338_s4 + $0x1b8] sm:$0xff] }
 0x314   : > { %3387 = vmatmul.msk.f32.gmra.mxu0 %vm1330_vm10, %v3379_v28  ;;  %3395 = vmatmul.msk.f32.gmra.mxu1 %vm1330_vm10, %v3379_v28 }
 0x315   : > { %v4883_v58 = vadd.f32 %v1772_v9, %v1682_v3  ;;  %v4885_v17 = vadd.f32 %v1813_v10, %v1683_v57  ;;  %v3355_v9 = vld [vmem:[%s5338_s4 + $0x1a0] sm:$0xff] }
 0x317   : > { %v1787_v42 = vpop.f32.mrf.mxu0  ;;  %v1828_v61 = vpop.f32.mrf.mxu1 }
 0x318   : > { %3360 = vmatmul.msk.f32.gmra.mxu2 %vm1330_vm10, %v3352_v18  ;;  %3368 = vmatmul.msk.f32.gmra.mxu3 %vm1330_vm10, %v3352_v18 }
 0x31b   : > { %v1620_v31 = vpop.f32.mrf.mxu2  ;;  %v1661_v43 = vpop.f32.mrf.mxu3 }
 0x31c   : > { %v1684_v32 = vadd.f32 %v1620_v31, %v4779_v21  ;;  %v1685_v44 = vadd.f32 %v1661_v43, %v4781_v33  ;;  %v3380_v21 = vld [vmem:[%s5338_s4 + $0x1e8] sm:$0xff]  ;;  %v3399_v31 = vld [vmem:[%s5338_s4 + $0x200] sm:$0xff] }
 0x31d   : > { %3388 = vmatmul.msk.f32.gmra.mxu0 %vm1330_vm10, %v3380_v21  ;;  %3396 = vmatmul.msk.f32.gmra.mxu1 %vm1330_vm10, %v3380_v21  ;;  %v3400_v21 = vld [vmem:[%s5338_s4 + $0x208] sm:$0xff] }
 0x31e   : > { %v4902_v60 = vadd.f32 %v1775_v27, %v1684_v32  ;;  %v4904_v5 = vadd.f32 %v1816_v46, %v1685_v44 }
 0x31f   : > { %v1790_v53 = vpop.f32.mrf.mxu0 }
 0x320   : > { %3361 = vmatmul.msk.f32.gmra.mxu2 %vm1330_vm10, %v3353_v59  ;;  %3369 = vmatmul.msk.f32.gmra.mxu3 %vm1330_vm10, %v3353_v59 }
 0x323   : > { %v1623_v33 = vpop.f32.mrf.mxu2  ;;  %v1664_v11 = vpop.f32.mrf.mxu3 }
 0x324   : > { %v1686_v26 = vadd.f32 %v1623_v33, %v4794_v51  ;;  %v1687_v12 = vadd.f32 %v1664_v11, %v4797_v6  ;;  %v3381_v51 = vld [vmem:[%s5338_s4 + $0x1f0] sm:$0xff] }
 0x325   : > { %3389 = vmatmul.msk.f32.gmra.mxu0 %vm1330_vm10, %v3381_v51  ;;  %3397 = vmatmul.msk.f32.gmra.mxu1 %vm1330_vm10, %v3381_v51 }
 0x326   : > { %v4918_v45 = vadd.f32 %v1778_v38, %v1686_v26  ;;  %v4920_v41 = vadd.f32 %v1819_v24, %v1687_v12 }
 0x327   : > { %v1793_v24 = vpop.f32.mrf.mxu0 }
 0x328   : > { %3362 = vmatmul.msk.f32.gmra.mxu2 %vm1330_vm10, %v3354_v62  ;;  %3370 = vmatmul.msk.f32.gmra.mxu3 %vm1330_vm10, %v3354_v62 }
 0x32b   : > { %v1626_v6 = vpop.f32.mrf.mxu2  ;;  %v1667_v48 = vpop.f32.mrf.mxu3 }
 0x32c   : > { %v1688_v37 = vadd.f32 %v1626_v6, %v4810_v8  ;;  %v1689_v50 = vadd.f32 %v1667_v48, %v4813_v19  ;;  %v1831_v8 = vpop.f32.mrf.mxu1 }
 0x32d   : > { %3390 = vmatmul.msk.f32.gmra.mxu0 %vm1330_vm10, %v3382_v40  ;;  %3398 = vmatmul.msk.f32.gmra.mxu1 %vm1330_vm10, %v3382_v40  ;;  %v3402_v40 = vld [vmem:[%s5338_s4 + $0x218] sm:$0xff] }
 0x32e   : > { %v4934_v10 = vadd.f32 %v1781_v13, %v1688_v37  ;;  %v4936_v25 = vadd.f32 %v1822_v20, %v1689_v50 }
 0x32f   : > { %v2082_v13 = vpop.f32.mrf.mxu0 }
 0x330   : > { %3363 = vmatmul.msk.f32.gmra.mxu2 %vm1330_vm10, %v3355_v9  ;;  %3371 = vmatmul.msk.f32.gmra.mxu3 %vm1330_vm10, %v3355_v9 }
 0x333   : > { %v1629_v19 = vpop.f32.mrf.mxu2  ;;  %v1670_v54 = vpop.f32.mrf.mxu3 }
 0x334   : > { %v1690_v27 = vadd.f32 %v1629_v19, %v4825_v36  ;;  %v1691_v46 = vadd.f32 %v1670_v54, %v4827_v49  ;;  %v1834_v49 = vpop.f32.mrf.mxu1 }
 0x336   : > { %v4950_v16 = vadd.f32 %v1784_v52, %v1690_v27  ;;  %v4952_v30 = vadd.f32 %v1825_v39, %v1691_v46 }
 0x337   : > { %v2085_v44 = vpop.f32.mrf.mxu0 }
 0x338   : > { %3364 = vmatmul.msk.f32.gmra.mxu2 %vm1330_vm10, %v3356_v15  ;;  %3372 = vmatmul.msk.f32.gmra.mxu3 %vm1330_vm10, %v3356_v15 }
 0x33b   : > { %v1632_v22 = vpop.f32.mrf.mxu2  ;;  %v1673_v55 = vpop.f32.mrf.mxu3 }
 0x33c   : > { %v1692_v38 = vadd.f32 %v1632_v22, %v4839_v63  ;;  %v1693_v36 = vadd.f32 %v1673_v55, %v4841_v0  ;;  %v2123_v20 = vpop.f32.mrf.mxu1 }
 0x33e   : > { %v4961_v1 = vadd.f32 %v1787_v42, %v1692_v38  ;;  %v4963_v14 = vadd.f32 %v1828_v61, %v1693_v36  ;;  %v3401_v61 = vld [vmem:[%s5338_s4 + $0x210] sm:$0xff] }
 0x33f   : > { %v2088_v26 = vpop.f32.mrf.mxu0 }
 0x340   : > { %3365 = vmatmul.msk.f32.gmra.mxu2 %vm1330_vm10, %v3357_v56  ;;  %3373 = vmatmul.msk.f32.gmra.mxu3 %vm1330_vm10, %v3357_v56 }
 0x343   : > { %v1635_v34 = vpop.f32.mrf.mxu2  ;;  %v1676_v7 = vpop.f32.mrf.mxu3 }
 0x344   : > { %v1694_v63 = vadd.f32 %v1635_v34, %v4853_v4  ;;  %v1695_v0 = vadd.f32 %v1676_v7, %v4855_v47  ;;  %v2126_v59 = vpop.f32.mrf.mxu1 }
 0x346   : > { %v4972_v3 = vadd.f32 %v1790_v53, %v1694_v63  ;;  %v4974_v57 = vadd.f32 %v1831_v8, %v1695_v0 }
 0x347   : > { %v2091_v9 = vpop.f32.mrf.mxu0 }
 0x348   : > { %3366 = vmatmul.msk.f32.gmra.mxu2 %vm1330_vm10, %v3358_v29  ;;  %3374 = vmatmul.msk.f32.gmra.mxu3 %vm1330_vm10, %v3358_v29 }
 0x34b   : > { %v1638_v18 = vpop.f32.mrf.mxu2  ;;  %v1679_v28 = vpop.f32.mrf.mxu3 }
 0x34c   : > { %v1696_v4 = vadd.f32 %v1638_v18, %v4867_v2  ;;  %v1697_v47 = vadd.f32 %v1679_v28, %v4869_v23  ;;  %v2129_v12 = vpop.f32.mrf.mxu1 }
 0x34e   : > { %v4983_v43 = vadd.f32 %v1793_v24, %v1696_v4  ;;  %v4985_v32 = vadd.f32 %v1834_v49, %v1697_v47 }
 0x34f   : > { %v2094_v22 = vpop.f32.mrf.mxu0 }
 0x350   : > { %3407 = vmatmul.msk.f32.vlgmr.msra.gmra.mxu2 %vm1330_vm10, %v3399_v31  ;;  %3415 = vmatmul.msk.f32.vlgmr.msra.gmra.mxu3 %vm1330_vm10, %v3399_v31 }
 0x353   : > { %v1927_v52 = vpop.f32.mrf.mxu2  ;;  %v1968_v39 = vpop.f32.mrf.mxu3 }
 0x354   : > { %v1992_v2 = vadd.f32 %v1927_v52, %v4883_v58  ;;  %v1993_v23 = vadd.f32 %v1968_v39, %v4885_v17 }
 0x356   : > { %v4994_v33 = vadd.f32 %v2082_v13, %v1992_v2  ;;  %v4996_v11 = vadd.f32 %v2123_v20, %v1993_v23 }
 0x357   : > { %v2097_v34 = vpop.f32.mrf.mxu0 }
 0x358   : > { %3408 = vmatmul.msk.f32.gmra.mxu2 %vm1330_vm10, %v3400_v21  ;;  %3416 = vmatmul.msk.f32.gmra.mxu3 %vm1330_vm10, %v3400_v21 }
 0x35b   : > { %v1930_v62 = vpop.f32.mrf.mxu2  ;;  %v1971_v42 = vpop.f32.mrf.mxu3 }
 0x35c   : > { %v1994_v58 = vadd.f32 %v1930_v62, %v4902_v60  ;;  %v1995_v17 = vadd.f32 %v1971_v42, %v4904_v5  ;;  %v2132_v5 = vpop.f32.mrf.mxu1 }
 0x35e   : > { %v5005_v51 = vadd.f32 %v2085_v44, %v1994_v58  ;;  %v5007_v6 = vadd.f32 %v2126_v59, %v1995_v17 }
 0x35f   : > { %v2100_v18 = vpop.f32.mrf.mxu0 }
 0x360   : > { %3409 = vmatmul.msk.f32.gmra.mxu2 %vm1330_vm10, %v3401_v61  ;;  %3417 = vmatmul.msk.f32.gmra.mxu3 %vm1330_vm10, %v3401_v61 }
 0x363   : > { %v1933_v48 = vpop.f32.mrf.mxu2  ;;  %v1974_v37 = vpop.f32.mrf.mxu3 }
 0x364   : > { %v1996_v50 = vadd.f32 %v1933_v48, %v4918_v45  ;;  %v1997_v60 = vadd.f32 %v1974_v37, %v4920_v41  ;;  %v3403_v41 = vld [vmem:[%s5338_s4 + $0x220] sm:$0xff]  ;;  %v2135_v55 = vpop.f32.mrf.mxu1 }
 0x366   : > { %v2151_v53 = vadd.f32 %v2088_v26, %v1996_v50  ;;  %v2152_v8 = vadd.f32 %v2129_v12, %v1997_v60 }
 0x368   : > { %3410 = vmatmul.msk.f32.gmra.mxu2 %vm1330_vm10, %v3402_v40  ;;  %3418 = vmatmul.msk.f32.gmra.mxu3 %vm1330_vm10, %v3402_v40 }
 0x36b   : > { %v1936_v19 = vpop.f32.mrf.mxu2  ;;  %v1977_v54 = vpop.f32.mrf.mxu3 }
 0x36c   : > { %v1998_v27 = vadd.f32 %v1936_v19, %v4934_v10  ;;  %v1999_v45 = vadd.f32 %v1977_v54, %v4936_v25  ;;  %v3404_v25 = vld [vmem:[%s5338_s4 + $0x228] sm:$0xff]  ;;  %v2138_v7 = vpop.f32.mrf.mxu1 }
 0x36e   : > { %v2153_v46 = vadd.f32 %v2091_v9, %v1998_v27  ;;  %v2154_v15 = vadd.f32 %v2132_v5, %v1999_v45 }
 0x370   : > { %3411 = vmatmul.msk.f32.gmra.mxu2 %vm1330_vm10, %v3403_v41  ;;  %3419 = vmatmul.msk.f32.gmra.mxu3 %vm1330_vm10, %v3403_v41 }
 0x373   : > { %v1939_v38 = vpop.f32.mrf.mxu2  ;;  %v1980_v36 = vpop.f32.mrf.mxu3 }
 0x374   : > { %v2000_v24 = vadd.f32 %v1939_v38, %v4950_v16  ;;  %v2001_v10 = vadd.f32 %v1980_v36, %v4952_v30  ;;  %v3405_v30 = vld [vmem:[%s5338_s4 + $0x230] sm:$0xff]  ;;  %v2141_v28 = vpop.f32.mrf.mxu1 }
 0x376   : > { %v2155_v49 = vadd.f32 %v2094_v22, %v2000_v24  ;;  %v2156_v56 = vadd.f32 %v2135_v55, %v2001_v10 }
 0x378   : > { %3412 = vmatmul.msk.f32.gmra.mxu2 %vm1330_vm10, %v3404_v25  ;;  %3420 = vmatmul.msk.f32.gmra.mxu3 %vm1330_vm10, %v3404_v25 }
 0x37b   : > { %v1942_v63 = vpop.f32.mrf.mxu2  ;;  %v1983_v0 = vpop.f32.mrf.mxu3 }
 0x37c   : > { %v2002_v29 = vadd.f32 %v1942_v63, %v4961_v1  ;;  %v2003_v16 = vadd.f32 %v1983_v0, %v4963_v14  ;;  %v3406_v14 = vld [vmem:[%s5338_s4 + $0x238] sm:$0xff]  ;;  %v2639_v0 = vpop.permute.xlu0 %2638 }
 0x37e   : > { %v2157_v13 = vadd.f32 %v2097_v34, %v2002_v29  ;;  %v2158_v20 = vadd.f32 %v2138_v7, %v2003_v16 }
 0x380   : > { %3413 = vmatmul.msk.f32.gmra.mxu2 %vm1330_vm10, %v3405_v30  ;;  %3421 = vmatmul.msk.f32.gmra.mxu3 %vm1330_vm10, %v3405_v30  ;;  %v2703_v30 = vpop.permute.xlu2 %2702 }
 0x383   : > { %v1945_v4 = vpop.f32.mrf.mxu2  ;;  %v1986_v47 = vpop.f32.mrf.mxu3 }
 0x384   : > { %v2004_v31 = vadd.f32 %v1945_v4, %v4972_v3  ;;  %v2005_v1 = vadd.f32 %v1986_v47, %v4974_v57  ;;  %v3439_v4 = vld [vmem:[%s5341_s7 + $0x100] sm:$0xff] }
 0x385   : > { %v3455_v47 = vld [vmem:[%s5341_s7 + $0x180] sm:$0xff] }
 0x386   : > { %v2159_v44 = vadd.f32 %v2100_v18, %v2004_v31  ;;  %v2160_v59 = vadd.f32 %v2141_v28, %v2005_v1  ;;  %v3423_v18 = vld [vmem:[%s5341_s7 + $0x80] sm:$0xff]  ;;  %v2773_v31 = vld [vmem:[%s5341_s7 + $0x8] sm:$0xff] }
 0x388   : > { %3414 = vmatmul.msk.f32.gmra.mxu2 %vm1330_vm10, %v3406_v14  ;;  %3422 = vmatmul.msk.f32.gmra.mxu3 %vm1330_vm10, %v3406_v14 }
 0x38b   : > { %v1948_v52 = vpop.f32.mrf.mxu2  ;;  %v1989_v39 = vpop.f32.mrf.mxu3 }
 0x38c   : > { %v5047_v2 = vadd.f32 %v1948_v52, %v4983_v43  ;;  %v5050_v23 = vadd.f32 %v1989_v39, %v4985_v32  ;;  %v3440_v52 = vld [vmem:[%s5341_s7 + $0x108] sm:$0xff] }
 0x38d   : > { %v3456_v39 = vld [vmem:[%s5341_s7 + $0x188] sm:$0xff] }
 0x393   : > { %v2237_v3 = vpop.f32.mrf.mxu2  ;;  %v2278_v57 = vpop.f32.mrf.mxu3 }
 0x394   : > { %v2302_v21 = vadd.f32 %v2237_v3, %v4994_v33  ;;  %v2303_v26 = vadd.f32 %v2278_v57, %v4996_v11  ;;  %v5064_v33 = vpop.f32.mrf.mxu0 }
 0x39b   : > { %v2240_v12 = vpop.f32.mrf.mxu2  ;;  %v2281_v62 = vpop.f32.mrf.mxu3 }
 0x39c   : > { %v2304_v42 = vadd.f32 %v2240_v12, %v5005_v51  ;;  %v2305_v58 = vadd.f32 %v2281_v62, %v5007_v6  ;;  %v5070_v6 = vpop.f32.mrf.mxu1 }
 0x3a3   : > { %v2243_v17 = vpop.f32.mrf.mxu2  ;;  %v2284_v61 = vpop.f32.mrf.mxu3 }
 0x3a4   : > { %v5056_v48 = vadd.f32 %v2243_v17, %v2151_v53  ;;  %v5058_v43 = vadd.f32 %v2284_v61, %v2152_v8  ;;  %v2392_v8 = vpop.f32.mrf.mxu0  ;;  %v2433_v27 = vpop.f32.mrf.mxu1 }
 0x3a5   : > { %v2457_v10 = vadd.f32 %v2392_v8, %v2302_v21  ;;  %v2458_v25 = vadd.f32 %v2433_v27, %v2303_v26 }
 0x3ab   : > { %v2246_v32 = vpop.f32.mrf.mxu2  ;;  %v2287_v37 = vpop.f32.mrf.mxu3 }
 0x3ac   : > { %v5060_v50 = vadd.f32 %v2246_v32, %v2153_v46  ;;  %v5062_v60 = vadd.f32 %v2287_v37, %v2154_v15  ;;  %v2395_v22 = vpop.f32.mrf.mxu0  ;;  %v2436_v55 = vpop.f32.mrf.mxu1 }
 0x3ad   : > { %v2459_v3 = vadd.f32 %v2395_v22, %v2304_v42  ;;  %v2460_v57 = vadd.f32 %v2436_v55, %v2305_v58  ;;  %v2644_v32 = vpop.permute.xlu1 %2643  ;;  %v2708_v22 = vpop.permute.xlu0 %2707 }
 0x3b3   : > { %v2249_v11 = vpop.f32.mrf.mxu2  ;;  %v2290_v9 = vpop.f32.mrf.mxu3 }
 0x3b4   : > { %v5066_v5 = vadd.f32 %v2249_v11, %v2155_v49  ;;  %v5068_v51 = vadd.f32 %v2290_v9, %v2156_v56  ;;  %v2398_v24 = vpop.f32.mrf.mxu0  ;;  %v2439_v34 = vpop.f32.mrf.mxu1 }
 0x3bb   : > { %v2252_v40 = vpop.f32.mrf.mxu2  ;;  %v2293_v53 = vpop.f32.mrf.mxu3 }
 0x3bc   : > { %v5072_v19 = vadd.f32 %v2252_v40, %v2157_v13  ;;  %v5074_v54 = vadd.f32 %v2293_v53, %v2158_v20  ;;  %v2772_v20 = vld [vmem:[%s5341_s7] sm:$0xff]  ;;  %v2401_v1 = vpop.f32.mrf.mxu0  ;;  %v2442_v53 = vpop.f32.mrf.mxu1 }
 0x3c3   : > { %v2255_v45 = vpop.f32.mrf.mxu2  ;;  %v2296_v41 = vpop.f32.mrf.mxu3 }
 0x3c4   : > { %v5076_v46 = vadd.f32 %v2255_v45, %v2159_v44  ;;  %v5078_v15 = vadd.f32 %v2296_v41, %v2160_v59  ;;  %v3424_v59 = vld [vmem:[%s5341_s7 + $0x88] sm:$0xff] }
 0x3cb   : > { %v5080_v38 = vpop.f32.mrf.mxu2  ;;  %v5082_v36 = vpop.f32.mrf.mxu3 }
 0x3d3   : > { %v2547_v49 = vpop.f32.mrf.mxu2  ;;  %v2588_v56 = vpop.f32.mrf.mxu3 }
 0x3d4   : > { %v2612_v7 = vadd.f32 %v2547_v49, %v2457_v10  ;;  %v2613_v63 = vadd.f32 %v2588_v56, %v2458_v25  ;;  %v2774_v49 = vld [vmem:[%s5341_s7 + $0x10] sm:$0xff] }
 0x3d5   : > { %v3425_v56 = vld [vmem:[%s5341_s7 + $0x90] sm:$0xff] }
 0x3d6   : > { %v2676_v29 = vmul.f32 %v2639_v0, %v2612_v7  ;;  %v2677_v16 = vmul.f32 %v2639_v0, %v2613_v63  ;;  %v2461_v63 = vadd.f32 %v2398_v24, %v5056_v48  ;;  %v2462_v0 = vadd.f32 %v2439_v34, %v5058_v43  ;;  %v3426_v43 = vld [vmem:[%s5341_s7 + $0x98] sm:$0xff] }
 0x3d7   : > { %v3442_v24 = vld [vmem:[%s5341_s7 + $0x118] sm:$0xff] }
 0x3d8   : > { %v2740_v13 = vadd.f32 %v2703_v30, %v2676_v29  ;;  %v2741_v28 = vadd.f32 %v2703_v30, %v2677_v16  ;;  %v3441_v29 = vld [vmem:[%s5341_s7 + $0x110] sm:$0xff]  ;;  %v2775_v30 = vld [vmem:[%s5341_s7 + $0x18] sm:$0xff] }
 0x3d9   : > { %v3457_v16 = vld [vmem:[%s5341_s7 + $0x190] sm:$0xff]  ;;  %v3458_v34 = vld [vmem:[%s5341_s7 + $0x198] sm:$0xff] }
 0x3da   : > { %v2756_v14 = vmax.f32 %v2740_v13, 0.0  ;;  %v2757_v44 = vmax.f32 %v2741_v28, 0.0 }
 0x3db   : > { %v2550_v21 = vpop.f32.mrf.mxu2  ;;  %v2591_v26 = vpop.f32.mrf.mxu3 }
 0x3dc   : > { %v2788_v12 = vmul.f32 %v2772_v20, %v2756_v14  ;;  %v2849_v62 = vmul.f32 %v3423_v18, %v2756_v14  ;;  %v2910_v17 = vmul.f32 %v3439_v4, %v2756_v14  ;;  %v2971_v61 = vmul.f32 %v3455_v47, %v2756_v14  ;;  %v5125_v18 = vpop.f32.mrf.mxu0 }
 0x3dd   : > { %v2789_v37 = vmul.f32 %v2773_v31, %v2757_v44  ;;  %v2850_v11 = vmul.f32 %v3424_v59, %v2757_v44  ;;  %v2911_v9 = vmul.f32 %v3440_v52, %v2757_v44  ;;  %v2972_v40 = vmul.f32 %v3456_v39, %v2757_v44  ;;  %v2649_v52 = vpop.permute.xlu1 %2648 }
 0x3de   : > { %v2614_v8 = vadd.f32 %v2550_v21, %v2459_v3  ;;  %v2615_v27 = vadd.f32 %v2591_v26, %v2460_v57  ;;  %v2445_v26 = vpop.f32.mrf.mxu1 }
 0x3df   : > { %v2804_v45 = vadd.f32 %v2789_v37, %v2788_v12  ;;  %v2865_v41 = vadd.f32 %v2850_v11, %v2849_v62  ;;  %v2926_v10 = vadd.f32 %v2911_v9, %v2910_v17  ;;  %v2987_v25 = vadd.f32 %v2972_v40, %v2971_v61  ;;  %v2713_v40 = vpop.permute.xlu2 %2712 }
 0x3e0   : > { %v2678_v42 = vmul.f32 %v2644_v32, %v2614_v8  ;;  %v2679_v58 = vmul.f32 %v2644_v32, %v2615_v27  ;;  %v2463_v32 = vadd.f32 %v2401_v1, %v5060_v50  ;;  %v2464_v37 = vadd.f32 %v2442_v53, %v5062_v60  ;;  %v3443_v60 = vld [vmem:[%s5341_s7 + $0x120] sm:$0xff] }
 0x3e1   : > { %v3459_v53 = vld [vmem:[%s5341_s7 + $0x1a0] sm:$0xff] }
 0x3e2   : > { %v2742_v55 = vadd.f32 %v2708_v22, %v2678_v42  ;;  %v2743_v7 = vadd.f32 %v2708_v22, %v2679_v58 }
 0x3e3   : > { %v2553_v13 = vpop.f32.mrf.mxu2  ;;  %v2594_v20 = vpop.f32.mrf.mxu3 }
 0x3e4   : > { %v2758_v28 = vmax.f32 %v2742_v55, 0.0  ;;  %v2759_v48 = vmax.f32 %v2743_v7, 0.0  ;;  %v2616_v4 = vadd.f32 %v2553_v13, %v2461_v63  ;;  %v2617_v47 = vadd.f32 %v2594_v20, %v2462_v0  ;;  %v2776_v55 = vld [vmem:[%s5341_s7 + $0x20] sm:$0xff]  ;;  %v3428_v0 = vld [vmem:[%s5341_s7 + $0xa8] sm:$0xff] }
 0x3e6   : > { %v2790_v31 = vmul.f32 %v2774_v49, %v2758_v28  ;;  %v2851_v14 = vmul.f32 %v3425_v56, %v2758_v28  ;;  %v2912_v44 = vmul.f32 %v3441_v29, %v2758_v28  ;;  %v2973_v59 = vmul.f32 %v3457_v16, %v2758_v28  ;;  %v2654_v56 = vpop.permute.xlu0 %2653  ;;  %v3444_v29 = vld [vmem:[%s5341_s7 + $0x128] sm:$0xff] }
 0x3e7   : > { %v2791_v39 = vmul.f32 %v2775_v30, %v2759_v48  ;;  %v2852_v3 = vmul.f32 %v3426_v43, %v2759_v48  ;;  %v2913_v57 = vmul.f32 %v3442_v24, %v2759_v48  ;;  %v2974_v21 = vmul.f32 %v3458_v34, %v2759_v48  ;;  %v3460_v16 = vld [vmem:[%s5341_s7 + $0x1a8] sm:$0xff]  ;;  %v2407_v30 = vpop.f32.mrf.mxu0 }
 0x3e8   : > { %v2805_v12 = vadd.f32 %v2804_v45, %v2790_v31  ;;  %v2866_v62 = vadd.f32 %v2865_v41, %v2851_v14  ;;  %v2927_v17 = vadd.f32 %v2926_v10, %v2912_v44  ;;  %v2988_v61 = vadd.f32 %v2987_v25, %v2973_v59  ;;  %v3427_v45 = vld [vmem:[%s5341_s7 + $0xa0] sm:$0xff]  ;;  %v2777_v10 = vld [vmem:[%s5341_s7 + $0x28] sm:$0xff]  ;;  %v2718_v14 = vpop.permute.xlu1 %2717 }
 0x3e9   : > { %v2680_v11 = vmul.f32 %v2649_v52, %v2616_v4  ;;  %v2681_v9 = vmul.f32 %v2649_v52, %v2617_v47 }
 0x3ea   : > { %v2806_v8 = vadd.f32 %v2805_v12, %v2791_v39  ;;  %v2867_v27 = vadd.f32 %v2866_v62, %v2852_v3  ;;  %v2928_v42 = vadd.f32 %v2927_v17, %v2913_v57  ;;  %v2989_v58 = vadd.f32 %v2988_v61, %v2974_v21  ;;  %v2448_v21 = vpop.f32.mrf.mxu1  ;;  %v2778_v62 = vld [vmem:[%s5341_s7 + $0x30] sm:$0xff] }
 0x3eb   : > { %v2744_v22 = vadd.f32 %v2713_v40, %v2680_v11  ;;  %v2745_v41 = vadd.f32 %v2713_v40, %v2681_v9  ;;  %v2556_v50 = vpop.f32.mrf.mxu2  ;;  %v2597_v1 = vpop.f32.mrf.mxu3  ;;  %v2465_v3 = vadd.f32 %v5125_v18, %v5066_v5  ;;  %v2466_v57 = vadd.f32 %v2445_v26, %v5068_v51  ;;  %v3429_v17 = vld [vmem:[%s5341_s7 + $0xb0] sm:$0xff]  ;;  %v2779_v18 = vld [vmem:[%s5341_s7 + $0x38] sm:$0xff] }
 0x3ec   : > { %v2618_v25 = vadd.f32 %v2556_v50, %v2463_v32  ;;  %v2619_v49 = vadd.f32 %v2597_v1, %v2464_v37  ;;  %v3445_v5 = vld [vmem:[%s5341_s7 + $0x130] sm:$0xff] }
 0x3ed   : > { %v2760_v7 = vmax.f32 %v2744_v22, 0.0  ;;  %v2761_v63 = vmax.f32 %v2745_v41, 0.0  ;;  %v3461_v51 = vld [vmem:[%s5341_s7 + $0x1b0] sm:$0xff]  ;;  %v3462_v22 = vld [vmem:[%s5341_s7 + $0x1b8] sm:$0xff] }
 0x3ee   : > { %v2682_v13 = vmul.f32 %v2654_v56, %v2618_v25  ;;  %v2683_v20 = vmul.f32 %v2654_v56, %v2619_v49 }
 0x3ef   : > { %v2792_v28 = vmul.f32 %v2776_v55, %v2760_v7  ;;  %v2853_v48 = vmul.f32 %v3427_v45, %v2760_v7  ;;  %v2914_v43 = vmul.f32 %v3443_v60, %v2760_v7  ;;  %v2975_v24 = vmul.f32 %v3459_v53, %v2760_v7  ;;  %v2659_v53 = vpop.permute.xlu2 %2658  ;;  %v2410_v7 = vpop.f32.mrf.mxu0 }
 0x3f0   : > { %v2793_v34 = vmul.f32 %v2777_v10, %v2761_v63  ;;  %v2854_v4 = vmul.f32 %v3428_v0, %v2761_v63  ;;  %v2915_v47 = vmul.f32 %v3444_v29, %v2761_v63  ;;  %v2976_v31 = vmul.f32 %v3460_v16, %v2761_v63 }
 0x3f1   : > { %v2807_v44 = vadd.f32 %v2806_v8, %v2792_v28  ;;  %v2868_v59 = vadd.f32 %v2867_v27, %v2853_v48  ;;  %v2929_v52 = vadd.f32 %v2928_v42, %v2914_v43  ;;  %v2990_v39 = vadd.f32 %v2989_v58, %v2975_v24  ;;  %v3430_v42 = vld [vmem:[%s5341_s7 + $0xb8] sm:$0xff]  ;;  %v2723_v43 = vpop.permute.xlu0 %2722 }
 0x3f2   : > { %v2746_v12 = vadd.f32 %v2718_v14, %v2682_v13  ;;  %v2747_v61 = vadd.f32 %v2718_v14, %v2683_v20  ;;  %v3446_v58 = vld [vmem:[%s5341_s7 + $0x138] sm:$0xff]  ;;  %v2467_v13 = vadd.f32 %v2407_v30, %v5072_v19  ;;  %v2468_v20 = vadd.f32 %v2448_v21, %v5074_v54  ;;  %v2780_v14 = vld [vmem:[%s5341_s7 + $0x40] sm:$0xff] }
 0x3f3   : > { %v2808_v32 = vadd.f32 %v2807_v44, %v2793_v34  ;;  %v2869_v37 = vadd.f32 %v2868_v59, %v2854_v4  ;;  %v2930_v11 = vadd.f32 %v2929_v52, %v2915_v47  ;;  %v2991_v9 = vadd.f32 %v2990_v39, %v2976_v31  ;;  %v2559_v26 = vpop.f32.mrf.mxu2  ;;  %v2600_v40 = vpop.f32.mrf.mxu3  ;;  %v3431_v44 = vld [vmem:[%s5341_s7 + $0xc0] sm:$0xff] }
 0x3f4   : > { %v2762_v8 = vmax.f32 %v2746_v12, 0.0  ;;  %v2763_v27 = vmax.f32 %v2747_v61, 0.0  ;;  %v2620_v55 = vadd.f32 %v2559_v26, %v2465_v3  ;;  %v2621_v45 = vadd.f32 %v2600_v40, %v2466_v57  ;;  %v3447_v52 = vld [vmem:[%s5341_s7 + $0x140] sm:$0xff]  ;;  %v2781_v3 = vld [vmem:[%s5341_s7 + $0x48] sm:$0xff]  ;;  %v2664_v12 = vpop.permute.xlu1 %2663 }
 0x3f5   : > { %v2161_v54 = vadd.f32 %v5064_v33, %v5047_v2  ;;  %v3463_v39 = vld [vmem:[%s5341_s7 + $0x1c0] sm:$0xff]  ;;  %v3432_v2 = vld [vmem:[%s5341_s7 + $0xc8] sm:$0xff] }
 0x3f6   : > { %v2794_v41 = vmul.f32 %v2778_v62, %v2762_v8  ;;  %v2855_v50 = vmul.f32 %v3429_v17, %v2762_v8  ;;  %v2916_v1 = vmul.f32 %v3445_v5, %v2762_v8  ;;  %v2977_v60 = vmul.f32 %v3461_v51, %v2762_v8  ;;  %v2451_v62 = vpop.f32.mrf.mxu1  ;;  %v3448_v33 = vld [vmem:[%s5341_s7 + $0x148] sm:$0xff] }
 0x3f7   : > { %v2795_v10 = vmul.f32 %v2779_v18, %v2763_v27  ;;  %v2856_v25 = vmul.f32 %v3430_v42, %v2763_v27  ;;  %v2917_v49 = vmul.f32 %v3446_v58, %v2763_v27  ;;  %v2978_v56 = vmul.f32 %v3462_v22, %v2763_v27  ;;  %v2728_v22 = vpop.permute.xlu2 %2727 }
 0x3f8   : > { %v2809_v63 = vadd.f32 %v2808_v32, %v2794_v41  ;;  %v2870_v0 = vadd.f32 %v2869_v37, %v2855_v50  ;;  %v2931_v29 = vadd.f32 %v2930_v11, %v2916_v1  ;;  %v2992_v16 = vadd.f32 %v2991_v9, %v2977_v60  ;;  %v3464_v32 = vld [vmem:[%s5341_s7 + $0x1c8] sm:$0xff]  ;;  %v2782_v60 = vld [vmem:[%s5341_s7 + $0x50] sm:$0xff] }
 0x3f9   : > { %v2684_v28 = vmul.f32 %v2659_v53, %v2620_v55  ;;  %v2685_v48 = vmul.f32 %v2659_v53, %v2621_v45  ;;  %v2162_v37 = vadd.f32 %v5070_v6, %v5050_v23  ;;  %v2316_v11 = vadd.f32 %v5080_v38, %v2161_v54  ;;  %v2413_v6 = vpop.f32.mrf.mxu0 }
 0x3fa   : > { %v2810_v24 = vadd.f32 %v2809_v63, %v2795_v10  ;;  %v2871_v34 = vadd.f32 %v2870_v0, %v2856_v25  ;;  %v2932_v4 = vadd.f32 %v2931_v29, %v2917_v49  ;;  %v2993_v47 = vadd.f32 %v2992_v16, %v2978_v56  ;;  %v3433_v10 = vld [vmem:[%s5341_s7 + $0xd0] sm:$0xff] }
 0x3fb   : > { %v2748_v31 = vadd.f32 %v2723_v43, %v2684_v28  ;;  %v2749_v59 = vadd.f32 %v2723_v43, %v2685_v48  ;;  %v2562_v19 = vpop.f32.mrf.mxu2  ;;  %v2603_v30 = vpop.f32.mrf.mxu3  ;;  %v2469_v1 = vadd.f32 %v2410_v7, %v5076_v46  ;;  %v2470_v23 = vadd.f32 %v2451_v62, %v5078_v15  ;;  %v3449_v25 = vld [vmem:[%s5341_s7 + $0x150] sm:$0xff]  ;;  %v3450_v28 = vld [vmem:[%s5341_s7 + $0x158] sm:$0xff] }
 0x3fc   : > { %v2622_v57 = vadd.f32 %v2562_v19, %v2467_v13  ;;  %v2623_v21 = vadd.f32 %v2603_v30, %v2468_v20  ;;  %v3465_v46 = vld [vmem:[%s5341_s7 + $0x1d0] sm:$0xff]  ;;  %v3434_v48 = vld [vmem:[%s5341_s7 + $0xd8] sm:$0xff]  ;;  %v2669_v43 = vpop.permute.xlu0 %2668 }
 0x3fd   : > { %v2764_v17 = vmax.f32 %v2748_v31, 0.0  ;;  %v2765_v61 = vmax.f32 %v2749_v59, 0.0  ;;  %v3466_v59 = vld [vmem:[%s5341_s7 + $0x1d8] sm:$0xff] }
 0x3fe   : > { %v2686_v9 = vmul.f32 %v2664_v12, %v2622_v57  ;;  %v2687_v5 = vmul.f32 %v2664_v12, %v2623_v21  ;;  %v2454_v19 = vpop.f32.mrf.mxu1 }
 0x3ff   : > { %v2796_v51 = vmul.f32 %v2780_v14, %v2764_v17  ;;  %v2857_v18 = vmul.f32 %v3431_v44, %v2764_v17  ;;  %v2918_v26 = vmul.f32 %v3447_v52, %v2764_v17  ;;  %v2979_v40 = vmul.f32 %v3463_v39, %v2764_v17 }
 0x400   : > { %v2797_v8 = vmul.f32 %v2781_v3, %v2765_v61  ;;  %v2858_v27 = vmul.f32 %v3432_v2, %v2765_v61  ;;  %v2919_v42 = vmul.f32 %v3448_v33, %v2765_v61  ;;  %v2980_v58 = vmul.f32 %v3464_v32, %v2765_v61  ;;  %v2733_v3 = vpop.permute.xlu1 %2732  ;;  %v3451_v32 = vld [vmem:[%s5341_s7 + $0x160] sm:$0xff] }
 0x401   : > { %v2811_v55 = vadd.f32 %v2810_v24, %v2796_v51  ;;  %v2872_v45 = vadd.f32 %v2871_v34, %v2857_v18  ;;  %v2933_v41 = vadd.f32 %v2932_v4, %v2918_v26  ;;  %v2994_v50 = vadd.f32 %v2993_v47, %v2979_v40  ;;  %v2783_v4 = vld [vmem:[%s5341_s7 + $0x58] sm:$0xff] }
 0x402   : > { %v2750_v38 = vadd.f32 %v2728_v22, %v2686_v9  ;;  %v2751_v53 = vadd.f32 %v2728_v22, %v2687_v5  ;;  %v2317_v24 = vadd.f32 %v5082_v36, %v2162_v37  ;;  %v2471_v34 = vadd.f32 %v2413_v6, %v2316_v11  ;;  %v3435_v11 = vld [vmem:[%s5341_s7 + $0xe0] sm:$0xff] }
 0x403   : > { %v2565_v15 = vpop.f32.mrf.mxu2  ;;  %v2606_v49 = vpop.f32.mrf.mxu3  ;;  %v2934_v56 = vadd.f32 %v2933_v41, %v2919_v42  ;;  %v2873_v7 = vadd.f32 %v2872_v45, %v2858_v27  ;;  %v2812_v63 = vadd.f32 %v2811_v55, %v2797_v8  ;;  %v2995_v0 = vadd.f32 %v2994_v50, %v2980_v58  ;;  %v3452_v8 = vld [vmem:[%s5341_s7 + $0x168] sm:$0xff]  ;;  %v2784_v27 = vld [vmem:[%s5341_s7 + $0x60] sm:$0xff] }
 0x404   : > { %v2766_v29 = vmax.f32 %v2750_v38, 0.0  ;;  %v2767_v16 = vmax.f32 %v2751_v53, 0.0  ;;  %v2624_v13 = vadd.f32 %v2565_v15, %v2469_v1  ;;  %v2625_v20 = vadd.f32 %v2606_v49, %v2470_v23  ;;  %v3436_v55 = vld [vmem:[%s5341_s7 + $0xe8] sm:$0xff]  ;;  %v3467_v45 = vld [vmem:[%s5341_s7 + $0x1e0] sm:$0xff]  ;;  %v2674_v41 = vpop.permute.xlu2 %2673 }
 0x405   : > { %v2472_v33 = vadd.f32 %v2454_v19, %v2317_v24  ;;  %v2785_v23 = vld [vmem:[%s5341_s7 + $0x68] sm:$0xff] }
 0x406   : > { %v2798_v47 = vmul.f32 %v2782_v60, %v2766_v29  ;;  %v2859_v31 = vmul.f32 %v3433_v10, %v2766_v29  ;;  %v2920_v14 = vmul.f32 %v3449_v25, %v2766_v29  ;;  %v2981_v44 = vmul.f32 %v3465_v46, %v2766_v29  ;;  %v3468_v10 = vld [vmem:[%s5341_s7 + $0x1e8] sm:$0xff]  ;;  %v2738_v25 = vpop.permute.xlu0 %2737 }
 0x407   : > { %v2688_v30 = vmul.f32 %v2669_v43, %v2624_v13  ;;  %v2689_v54 = vmul.f32 %v2669_v43, %v2625_v20  ;;  %v2921_v52 = vmul.f32 %v3450_v28, %v2767_v16  ;;  %v2860_v39 = vmul.f32 %v3434_v48, %v2767_v16  ;;  %v3437_v20 = vld [vmem:[%s5341_s7 + $0xf0] sm:$0xff] }
 0x408   : > { %v2935_v36 = vadd.f32 %v2934_v56, %v2920_v14  ;;  %v2874_v57 = vadd.f32 %v2873_v7, %v2859_v31  ;;  %v2799_v21 = vmul.f32 %v2783_v4, %v2767_v16  ;;  %v2813_v12 = vadd.f32 %v2812_v63, %v2798_v47  ;;  %v2786_v4 = vld [vmem:[%s5341_s7 + $0x70] sm:$0xff]  ;;  %v3454_v14 = vld [vmem:[%s5341_s7 + $0x178] sm:$0xff] }
 0x409   : > { %v2752_v62 = vadd.f32 %v2733_v3, %v2688_v30  ;;  %v2753_v17 = vadd.f32 %v2733_v3, %v2689_v54  ;;  %v2982_v61 = vmul.f32 %v3466_v59, %v2767_v16  ;;  %v2996_v2 = vadd.f32 %v2995_v0, %v2981_v44  ;;  %v3453_v16 = vld [vmem:[%s5341_s7 + $0x170] sm:$0xff]  ;;  %v3438_v44 = vld [vmem:[%s5341_s7 + $0xf8] sm:$0xff] }
 0x40a   : > { %v2936_v37 = vadd.f32 %v2935_v36, %v2921_v52  ;;  %v2875_v9 = vadd.f32 %v2874_v57, %v2860_v39  ;;  %v2814_v5 = vadd.f32 %v2813_v12, %v2799_v21  ;;  %v3469_v31 = vld [vmem:[%s5341_s7 + $0x1f0] sm:$0xff]  ;;  %v2787_v54 = vld [vmem:[%s5341_s7 + $0x78] sm:$0xff] }
 0x40b   : > { %v2768_v51 = vmax.f32 %v2752_v62, 0.0  ;;  %v2769_v18 = vmax.f32 %v2753_v17, 0.0  ;;  %v2568_v26 = vpop.f32.mrf.mxu2  ;;  %v2609_v40 = vpop.f32.mrf.mxu3  ;;  %v2997_v42 = vadd.f32 %v2996_v2, %v2982_v61  ;;  %v3470_v52 = vld [vmem:[%s5341_s7 + $0x1f8] sm:$0xff] }
 0x40c   : > { %v2626_v58 = vadd.f32 %v2568_v26, %v2471_v34  ;;  %v2627_v22 = vadd.f32 %v2609_v40, %v2472_v33 }
 0x40d   : > { %v2922_v50 = vmul.f32 %v3451_v32, %v2768_v51  ;;  %v2861_v1 = vmul.f32 %v3435_v11, %v2768_v51  ;;  %v2923_v60 = vmul.f32 %v3452_v8, %v2769_v18  ;;  %v2800_v53 = vmul.f32 %v2784_v27, %v2768_v51 }
 0x40e   : > { %v2690_v6 = vmul.f32 %v2674_v41, %v2626_v58  ;;  %v2691_v38 = vmul.f32 %v2674_v41, %v2627_v22  ;;  %v2862_v15 = vmul.f32 %v3436_v55, %v2769_v18  ;;  %v2983_v56 = vmul.f32 %v3467_v45, %v2768_v51 }
 0x40f   : > { %v2937_v46 = vadd.f32 %v2936_v37, %v2922_v50  ;;  %v2876_v49 = vadd.f32 %v2875_v9, %v2861_v1  ;;  %v2801_v0 = vmul.f32 %v2785_v23, %v2769_v18  ;;  %v2815_v29 = vadd.f32 %v2814_v5, %v2800_v53 }
 0x410   : > { %v2754_v7 = vadd.f32 %v2738_v25, %v2690_v6  ;;  %v2755_v63 = vadd.f32 %v2738_v25, %v2691_v38  ;;  %v2984_v48 = vmul.f32 %v3468_v10, %v2769_v18  ;;  %v2998_v43 = vadd.f32 %v2997_v42, %v2983_v56 }
 0x411   : > { %v2938_v13 = vadd.f32 %v2937_v46, %v2923_v60  ;;  %v2877_v28 = vadd.f32 %v2876_v49, %v2862_v15  ;;  %v2816_v47 = vadd.f32 %v2815_v29, %v2801_v0 }
 0x412   : > { %v2770_v24 = vmax.f32 %v2754_v7, 0.0  ;;  %v2771_v34 = vmax.f32 %v2755_v63, 0.0  ;;  %v2999_v59 = vadd.f32 %v2998_v43, %v2984_v48 }
 0x414   : > { %v2924_v19 = vmul.f32 %v3453_v16, %v2770_v24  ;;  %v2863_v30 = vmul.f32 %v3437_v20, %v2770_v24  ;;  %v2802_v39 = vmul.f32 %v2786_v4, %v2770_v24  ;;  %v2985_v3 = vmul.f32 %v3469_v31, %v2770_v24 }
 0x415   : > { %v2925_v36 = vmul.f32 %v3454_v14, %v2771_v34  ;;  %v2864_v21 = vmul.f32 %v3438_v44, %v2771_v34  ;;  %v2803_v62 = vmul.f32 %v2787_v54, %v2771_v34  ;;  %v2986_v61 = vmul.f32 %v3470_v52, %v2771_v34  ;;  %v3015_v34 = vld [vmem:[%s5342_s8] sm:$0x1] }
 0x416   : > { %v2939_v57 = vadd.f32 %v2938_v13, %v2924_v19  ;;  %v2878_v12 = vadd.f32 %v2877_v28, %v2863_v30  ;;  %v2817_v17 = vadd.f32 %v2816_v47, %v2802_v39  ;;  %v3000_v2 = vadd.f32 %v2999_v59, %v2985_v3 }
 0x418   : > { %v2940_v33 = vadd.f32 %v2939_v57, %v2925_v36  ;;  %v2879_v32 = vadd.f32 %v2878_v12, %v2864_v21  ;;  %v2818_v37 = vadd.f32 %v2817_v17, %v2803_v62  ;;  %v3001_v11 = vadd.f32 %v3000_v2, %v2986_v61 }
 0x41a   : > { %2941 = vadd.xlane.f32.xlu0 %v2940_v33  ;;  %2880 = vadd.xlane.f32.xlu2 %v2879_v32 }
 0x41b   : > { %2819 = vadd.xlane.f32.xlu1 %v2818_v37 }
 0x422   : > { %3002 = vadd.xlane.f32.xlu2 %v3001_v11 }
 0x48d   : > { %v2942_v9 = vpop.xlane.xlu0 %2941  ;;  %v2881_v5 = vpop.xlane.xlu2 %2880 }
 0x48e   : > { %v2943_v51 = vrot.slane %v2942_v9, 4  ;;  %v2882_v18 = vrot.slane %v2881_v5, 4  ;;  %v2820_v26 = vpop.xlane.xlu1 %2819 }
 0x48f   : > { %v2821_v40 = vrot.slane %v2820_v26, 4 }
 0x490   : > { %v2944_v8 = vadd.f32 %v2943_v51, %v2942_v9  ;;  %v2883_v27 = vadd.f32 %v2882_v18, %v2881_v5 }
 0x491   : > { %v2822_v42 = vadd.f32 %v2821_v40, %v2820_v26 }
 0x492   : > { %v2945_v58 = vrot.slane %v2944_v8, 2  ;;  %v2884_v22 = vrot.slane %v2883_v27, 2 }
 0x493   : > { %v2823_v55 = vrot.slane %v2822_v42, 2 }
 0x494   : > { %v2946_v45 = vadd.f32 %v2945_v58, %v2944_v8  ;;  %v2885_v41 = vadd.f32 %v2884_v22, %v2883_v27 }
 0x495   : > { %v3003_v50 = vpop.xlane.xlu2 %3002  ;;  %v2824_v1 = vadd.f32 %v2823_v55, %v2822_v42 }
 0x496   : > { %v3004_v23 = vrot.slane %v3003_v50, 4  ;;  %v2886_v6 = vrot.slane %v2885_v41, 1  ;;  %v2947_v38 = vrot.slane %v2946_v45, 1 }
 0x497   : > { %v2825_v60 = vrot.slane %v2824_v1, 1 }
 0x498   : > { %v3005_v53 = vadd.f32 %v3004_v23, %v3003_v50  ;;  %v2887_v10 = vadd.f32 %v2886_v6, %v2885_v41  ;;  %v2948_v46 = vadd.f32 %v2947_v38, %v2946_v45 }
 0x499   : > { %v2826_v25 = vadd.f32 %v2825_v60, %v2824_v1 }
 0x49a   : > { %v3006_v15 = vrot.slane %v3005_v53, 2 }
 0x49b   : > { %3476 = vpush %v2826_v25 }
 0x49c   : > { %v3007_v49 = vadd.f32 %v3006_v15, %v3005_v53  ;;  %3478 = vpush %v2887_v10 }
 0x49d   : > { %3480 = vpush %v2948_v46 }
 0x49e   : > { %v3008_v56 = vrot.slane %v3007_v49, 1 }
 0x4a0   : > { %v3009_v7 = vadd.f32 %v3008_v56, %v3007_v49 }
 0x4a2   : > { %3482 = vpush %v3009_v7 }
 0x4cc   : > { %s3477_s27 = spop %3476 }
 0x4cd   : > { %v2829_v63 = vstv %s3477_s27  ;;  %s3479_s16 = spop %3478  ;;  %s3032_s27 = sshll.u32 %s3028_s29, 4  ;;  %s3033_s27 = int_to_ptr.hbm [resolvable:$true] %s3032_s27 }
 0x4ce   : > { %v2830_v0 = vsel %vm2828_vm11, %v2829_v63, 0.0  ;;  %v2890_v29 = vstv %s3479_s16  ;;  %s3481_s21 = spop %3480  ;;  %s3709_s16 = sshra.s32 %s3033_s27, 4  ;;  %s3710_s16 = int_to_ptr.hbm [resolvable:$true] %s3709_s16 }
 0x4cf   : > { %v2891_v16 = vsel %vm2889_vm12, %v2890_v29, 0.0  ;;  %v2951_v20 = vstv %s3481_s21  ;;  %s3711_s21 = scalar_lea.hbm %s3710_s16, 1  ;;  %p3716_p0 = scmp.lt.s32.totalorder %s3710_s16, %s5343_s9 }
 0x4d0   : > { %v2892_v13 = vadd.f32 %v2891_v16, %v2830_v0  ;;  %v2952_v28 = vsel %vm2950_vm13, %v2951_v20, 0.0  ;;  %p3712_p11 = scmp.ne.s32.totalorder %s3710_s16, %s3711_s21 }
 0x4d2   : > { %v2953_v48 = vadd.f32 %v2952_v28, %v2892_v13  ;;  %p3713_p12 = pnand %p3712_p11, %p3856_p5 }
 0x4d3   : > { %s3483_s24 = spop %3482 }
 0x4d4   : > { %v3012_v43 = vstv %s3483_s24  ;;  %p3714_p13 = pneg %p3713_p12  ;;  %s3715_s24 = scalar_lea.hbm %s5343_s9, 2 }
 0x4d5   : > { %v3013_v24 = vsel %vm3011_vm14, %v3012_v43, 0.0  ;;  %p3717_p1 = scmp.lt.s32.totalorder %s3715_s24, %s3711_s21 }
 0x4d6   : > { %v3014_v4 = vadd.f32 %v3013_v24, %v2953_v48 }
 0x4d7   : > { %p3718_p2 = por %p3717_p1, %p3716_p0 }
 0x4d8   : > { %v3016_v35 = vadd.f32 %v3015_v34, %v3014_v4 }
 0x4d9   : > { %p3719_p3 = pnand %p3718_p2, %p3714_p13 }
 0x4da   : > { %3018 = vst.msk [vmem:[%s324_s25] sm:$0x1] %vm3017_vm15, %v3016_v35 }
 0x4db   : > { %3722 = shalt.err (!%p3719_p3)
}
 0x4dc   : > { %3484 = dma.vmem_to_hbm [thread:$0]  (%p3856_p5), %s3031_s14, 16, %s3033_s27, %s3020_s13  }
 0x4dd PF: > { %p3490_p4 = scmp.ge.s32.totalorder %s3757_s12, 2  ;;  %s3044_s22 = sand.u32 1, %s3745_s30  }
 0x4de   : > { %s3045_s17 = scalar_lea.sflag [#allocation3], %s3044_s22 }
 0x4df   : > { %p3487_p7 = pnand %p3490_p4, %p3860_p6 }
 0x4e1   : > { %p3488_p8 = pneg %p3487_p7 }
 0x4e3   : > { %3740 = dma.done.wait (%p3488_p8), %s3045_s17, 16  }
 0x4e4   : > { %3742 = vsyncadd (%p3488_p8), %s3045_s17, 4294967280  ;;  %p19_p9 = scmp.ge.s32.totalorder %s3843_s15, 4   ;;  %s5371_s30 = smov %s3749_s10 }
 0x4e5   : > { %s5372_s10 = smov %s3753_s11  ;;  %s5373_s11 = smov %s3854_s18 }
 0x4e6   : > { %s5374_s12 = smov %s3843_s15  ;;  %21 = sbr.rel (!%p19_p9) target bundleno = 3 (0x3), region = 110 }
 0x4eb   :  { %3050 = vsyncpa [#allocation3], 1 }
 0x4ec   :  { %3052 = vsyncpa [#allocation3 + $0x1], 1 }

</bundles_post_ra>
